<compile_context>
chip_gen: v7x
topology: tpu7x:2x2x1
jax: 0.10.0
libtpu: 0.0.40
codegen_flags: <defaults>
</compile_context>

<pallas_src>
import math

import jax
import jax.numpy as jnp
from jax.experimental import pallas as pl
from jax.experimental.pallas import tpu as pltpu


# ----------------------------------------------------------------------------
# Colour-space helpers (pure jnp; used both inside the kernel and by the
# pure-JAX reference check).
# TODO(synk): ImageProcessing.rgb_to_lab / rgb_to_hsv are external to the given
# spec; standard sRGB->CIELAB (with CURL's /100, /110 [0,1] normalisation) and
# standard RGB->HSV conversions are implemented here instead.
# ----------------------------------------------------------------------------
_LAB_EPS3 = (6.0 / 29.0) ** 3
_LAB_KAPPA = 1.0 / (3.0 * (6.0 / 29.0) ** 2)


def _srgb_to_linear(c):
    return jnp.where(
        c <= 0.04045,
        c * (1.0 / 12.92),
        ((jnp.maximum(c, 1e-4) + 0.055) * (1.0 / 1.055)) ** 2.4,
    )


def _lab_f(t):
    return jnp.where(
        t > _LAB_EPS3,
        jnp.maximum(t, 1e-4) ** (1.0 / 3.0),
        t * _LAB_KAPPA + 4.0 / 29.0,
    )


def _rgb_to_lab01(r, g, b):
    rl, gl, bl = _srgb_to_linear(r), _srgb_to_linear(g), _srgb_to_linear(b)
    x = 0.412453 * rl + 0.357580 * gl + 0.180423 * bl
    y = 0.212671 * rl + 0.715160 * gl + 0.072169 * bl
    z = 0.019334 * rl + 0.119193 * gl + 0.950227 * bl
    x = x * (1.0 / 0.950456)
    z = z * (1.0 / 1.088754)
    fx, fy, fz = _lab_f(x), _lab_f(y), _lab_f(z)
    L = 116.0 * fy - 16.0
    a = 500.0 * (fx - fy)
    bb = 200.0 * (fy - fz)
    # CURL-style normalisation to [0,1] followed by torch.clamp(..., 0, 1).
    L01 = jnp.clip(L * (1.0 / 100.0), 0.0, 1.0)
    a01 = jnp.clip((a * (1.0 / 110.0) + 1.0) * 0.5, 0.0, 1.0)
    b01 = jnp.clip((bb * (1.0 / 110.0) + 1.0) * 0.5, 0.0, 1.0)
    return L01, a01, b01


def _rgb_to_hsv01(r, g, b):
    r = jnp.clip(r, 1e-9, 1.0)
    g = jnp.clip(g, 1e-9, 1.0)
    b = jnp.clip(b, 1e-9, 1.0)
    mx = jnp.maximum(r, jnp.maximum(g, b))
    mn = jnp.minimum(r, jnp.minimum(g, b))
    df = mx - mn
    v = mx
    s = df / jnp.maximum(mx, 1e-9)
    safe_df = jnp.where(df > 0.0, df, 1.0)
    h_r_raw = (g - b) / safe_df
    h_r = h_r_raw - 6.0 * jnp.floor(h_r_raw * (1.0 / 6.0))   # mod 6 without lax.rem
    h_g = (b - r) / safe_df + 2.0
    h_b = (r - g) / safe_df + 4.0
    h = jnp.where(mx == r, h_r, jnp.where(mx == g, h_g, h_b))
    h = jnp.where(df > 0.0, h * (1.0 / 6.0), 0.0)
    return jnp.clip(h, 0.0, 1.0), jnp.clip(s, 0.0, 1.0), jnp.clip(v, 0.0, 1.0)


# ----------------------------------------------------------------------------
# Fused Pallas kernel: per-pixel colour conversions + L1 / cosine partial sums
# + LAB L-channel map emission.
# ----------------------------------------------------------------------------
def _curl_color_loss_kernel(p_ref, t_ref, sums_ref, p_l_ref, t_l_ref):
    k = pl.program_id(1)

    pr = p_ref[0, 0, :, :]
    pg = p_ref[0, 1, :, :]
    pb = p_ref[0, 2, :, :]
    tr = t_ref[0, 0, :, :]
    tg = t_ref[0, 1, :, :]
    tb = t_ref[0, 2, :, :]

    # ---- plain RGB: L1 + channel-wise cosine similarity --------------------
    rgb_abs = jnp.abs(pr - tr) + jnp.abs(pg - tg) + jnp.abs(pb - tb)
    dot = pr * tr + pg * tg + pb * tb
    p_norm = jnp.sqrt(pr * pr + pg * pg + pb * pb)
    t_norm = jnp.sqrt(tr * tr + tg * tg + tb * tb)
    cos_sim = dot / (jnp.maximum(p_norm, 1e-8) * jnp.maximum(t_norm, 1e-8))

    # ---- CIELAB (normalised + clamped): L1 ---------------------------------
    p_L, p_a, p_b = _rgb_to_lab01(pr, pg, pb)
    t_L, t_a, t_b = _rgb_to_lab01(tr, tg, tb)
    lab_abs = jnp.abs(p_L - t_L) + jnp.abs(p_a - t_a) + jnp.abs(p_b - t_b)

    # ---- HSV embedding (v*s*cos(2*pi*h), v*s*sin(2*pi*h), v): L1 -----------
    p_h, p_s, p_v = _rgb_to_hsv01(pr, pg, pb)
    t_h, t_s, t_v = _rgb_to_hsv01(tr, tg, tb)
    two_pi = 2.0 * math.pi
    p_vs = p_v * p_s
    t_vs = t_v * t_s
    hsv_abs = (
        jnp.abs(p_vs * jnp.cos(p_h * two_pi) - t_vs * jnp.cos(t_h * two_pi))
        + jnp.abs(p_vs * jnp.sin(p_h * two_pi) - t_vs * jnp.sin(t_h * two_pi))
        + jnp.abs(p_v - t_v)
    )

    # ---- lane-dense partial sums (reduce only the sublane/rows axis) -------
    partial = jnp.concatenate(
        [
            jnp.sum(lab_abs, axis=0, keepdims=True),
            jnp.sum(rgb_abs, axis=0, keepdims=True),
            jnp.sum(hsv_abs, axis=0, keepdims=True),
            jnp.sum(cos_sim, axis=0, keepdims=True),
        ],
        axis=0,
    )  # (4, LANES) f32

    @pl.when(k == 0)
    def _():
        sums_ref[...] = jnp.zeros_like(sums_ref)

    sums_ref[...] += partial[None, :, :]

    # L-channel maps feed the MS-SSIM pyramid outside the kernel.
    p_l_ref[...] = p_L[None, :, :]
    t_l_ref[...] = t_L[None, :, :]


def _pick_row_tile(rows, lanes, bytes_per_elem=4, budget_bytes=4 * 1024 * 1024):
    """Largest row tile (multiple of 8 dividing `rows`, or `rows` itself) whose
    double-buffered pred+target blocks stay within the VMEM budget."""
    def step_bytes(r):
        return 2 * 2 * 3 * r * lanes * bytes_per_elem  # 2 inputs x 2 buffers x 3 ch

    if step_bytes(rows) <= budget_bytes:
        return rows
    best = None
    r = 8
    while r < rows:
        if rows % r == 0 and step_bytes(r) <= budget_bytes:
            best = r
        r += 8
    return best if best is not None else rows


def _color_loss_pallas(pred, target):
    """Returns (sums (B,4,LANES), pred_L (B,R,LANES), targ_L (B,R,LANES)).

    sums rows: 0=LAB |.|_1, 1=RGB |.|_1, 2=HSV-embed |.|_1, 3=cosine-sim sum.
    """
    B, C, H, W = pred.shape
    assert C == 3, "CURLLoss expects RGB images"
    hw = H * W
    lanes = 128 if hw % 128 == 0 else hw
    rows = hw // lanes

    pred_r = pred.astype(jnp.float32).reshape(B, 3, rows, lanes)
    targ_r = target.astype(jnp.float32).reshape(B, 3, rows, lanes)

    r_tile = _pick_row_tile(rows, lanes)
    grid = (B, rows // r_tile)

    sums, pred_l, targ_l = pl.pallas_call(
        _curl_color_loss_kernel,
        out_shape=(
            jax.ShapeDtypeStruct((B, 4, lanes), jnp.float32),
            jax.ShapeDtypeStruct((B, rows, lanes), jnp.float32),
            jax.ShapeDtypeStruct((B, rows, lanes), jnp.float32),
        ),
        grid_spec=pltpu.PrefetchScalarGridSpec(
            num_scalar_prefetch=0,
            grid=grid,
            in_specs=[
                pl.BlockSpec((1, 3, r_tile, lanes), lambda b, k: (b, 0, k, 0)),
                pl.BlockSpec((1, 3, r_tile, lanes), lambda b, k: (b, 0, k, 0)),
            ],
            out_specs=(
                pl.BlockSpec((1, 4, lanes), lambda b, k: (b, 0, 0)),
                pl.BlockSpec((1, r_tile, lanes), lambda b, k: (b, k, 0)),
                pl.BlockSpec((1, r_tile, lanes), lambda b, k: (b, k, 0)),
            ),
        ),
        compiler_params=pltpu.CompilerParams(
            dimension_semantics=("parallel", "arbitrary"),
        ),
    )(pred_r, targ_r)
    return sums, pred_l, targ_l


# ----------------------------------------------------------------------------
# MS-SSIM on the LAB L channel (matches CURLLoss.compute_msssim / compute_ssim).
# TODO(synk): the 5-level pyramid uses XLA convolutions rather than a Pallas
# kernel; the 5x5 Gaussian is applied as a separable (5x1 then 1x5) depthwise
# conv over the 5 SSIM statistics batched into the channel axis, so each level
# costs only 2 small grouped convs.
# ----------------------------------------------------------------------------
def _gaussian_1d(window_size, sigma):
    xs = jnp.arange(window_size, dtype=jnp.float32) - window_size // 2
    g = jnp.exp(-(xs * xs) / (2.0 * sigma * sigma))
    return g / jnp.sum(g)


def _ssim_per_image(img1, img2, window_size=5):
    g1d = _gaussian_1d(window_size, 1.5)
    pad = window_size // 2
    nstats = 5

    # Batch all statistics into one 5-channel tensor, filter depthwise.
    x = jnp.concatenate(
        [img1, img2, img1 * img1, img2 * img2, img1 * img2], axis=1)  # (B,5,H,W)
    w_v = jnp.broadcast_to(g1d.reshape(1, 1, window_size, 1),
                           (nstats, 1, window_size, 1))
    w_h = jnp.broadcast_to(g1d.reshape(1, 1, 1, window_size),
                           (nstats, 1, 1, window_size))

    y = jax.lax.conv_general_dilated(
        x, w_v, window_strides=(1, 1), padding=((pad, pad), (0, 0)),
        dimension_numbers=("NCHW", "OIHW", "NCHW"), feature_group_count=nstats)
    y = jax.lax.conv_general_dilated(
        y, w_h, window_strides=(1, 1), padding=((0, 0), (pad, pad)),
        dimension_numbers=("NCHW", "OIHW", "NCHW"), feature_group_count=nstats)

    mu1 = y[:, 0:1]
    mu2 = y[:, 1:2]
    mu1_sq, mu2_sq, mu1_mu2 = mu1 * mu1, mu2 * mu2, mu1 * mu2
    sigma1_sq = y[:, 2:3] - mu1_sq
    sigma2_sq = y[:, 3:4] - mu2_sq
    sigma12 = y[:, 4:5] - mu1_mu2

    c1, c2 = 0.01 ** 2, 0.03 ** 2
    ssim_map = ((2.0 * mu1_mu2 + c1) * (2.0 * sigma12 + c2)) / (
        (mu1_sq + mu2_sq + c1) * (sigma1_sq + sigma2_sq + c2))
    v1 = 2.0 * sigma12 + c2
    v2 = sigma1_sq + sigma2_sq + c2
    return jnp.mean(ssim_map, axis=(1, 2, 3)), jnp.mean(v1 / v2, axis=(1, 2, 3))


def _avg_pool_2x2(x):
    B, C, H, W = x.shape
    h2, w2 = H // 2, W // 2
    x = x[:, :, : h2 * 2, : w2 * 2].reshape(B, C, h2, 2, w2, 2)
    return jnp.mean(x, axis=(3, 5))


def _msssim_per_image(img1, img2, window_size=5):
    weights = jnp.array([0.0448, 0.2856, 0.3001, 0.2363, 0.1333], jnp.float32)
    levels = 5
    ssims, mcs = [], []
    for lvl in range(levels):
        s, c = _ssim_per_image(img1, img2, window_size)
        ssims.append(s)
        mcs.append(c)
        if lvl < levels - 1:
            img1 = _avg_pool_2x2(img1)
            img2 = _avg_pool_2x2(img2)
    ssims = (jnp.stack(ssims, axis=0) + 1.0) * 0.5   # (levels, B)
    mcs = (jnp.stack(mcs, axis=0) + 1.0) * 0.5
    pow1 = mcs ** weights[:, None]
    pow2 = ssims ** weights[:, None]
    return jnp.prod(pow1[:-1] * pow2[-1][None, :], axis=0)  # (B,)


# ----------------------------------------------------------------------------
# CURLLoss.forward equivalent.
# ----------------------------------------------------------------------------
def curl_loss(predicted_img_batch, target_img_batch, gradient_regulariser):
    B, C, H, W = predicted_img_batch.shape
    sums, pred_l, targ_l = _color_loss_pallas(predicted_img_batch, target_img_batch)

    hw = H * W
    inv_chw = 1.0 / (3.0 * hw)
    inv_hw = 1.0 / hw

    l1_loss = jnp.sum(sums[:, 0, :], axis=-1) * inv_chw          # LAB L1, per image
    rgb_loss = jnp.sum(sums[:, 1, :], axis=-1) * inv_chw          # RGB L1
    hsv_loss = jnp.sum(sums[:, 2, :], axis=-1) * inv_chw          # HSV-embedding L1
    cosine_loss = 1.0 - jnp.sum(sums[:, 3, :], axis=-1) * inv_hw  # 1 - mean cos sim

    msssim = _msssim_per_image(pred_l.reshape(B, 1, H, W), targ_l.reshape(B, 1, H, W))
    ssim_loss = 1.0 - msssim

    l1_v = jnp.mean(l1_loss)
    rgb_v = jnp.mean(rgb_loss)
    hsv_v = jnp.mean(hsv_loss)
    cos_v = jnp.mean(cosine_loss)
    ssim_v = jnp.mean(ssim_loss)
    return (rgb_v + cos_v + l1_v + hsv_v + 10.0 * ssim_v
            + 1e-6 * gradient_regulariser) / 6.0


# ----------------------------------------------------------------------------
# Pure-JAX reference for the Pallas colour-loss kernel (correctness check).
# ----------------------------------------------------------------------------
def _color_loss_reference(pred, target):
    p = pred.astype(jnp.float32)
    t = target.astype(jnp.float32)
    pr, pg, pb = p[:, 0], p[:, 1], p[:, 2]
    tr, tg, tb = t[:, 0], t[:, 1], t[:, 2]

    p_L, p_a, p_b = _rgb_to_lab01(pr, pg, pb)
    t_L, t_a, t_b = _rgb_to_lab01(tr, tg, tb)
    lab_sum = jnp.sum(jnp.abs(p_L - t_L) + jnp.abs(p_a - t_a) + jnp.abs(p_b - t_b),
                      axis=(1, 2))
    rgb_sum = jnp.sum(jnp.abs(pr - tr) + jnp.abs(pg - tg) + jnp.abs(pb - tb),
                      axis=(1, 2))

    p_h, p_s, p_v = _rgb_to_hsv01(pr, pg, pb)
    t_h, t_s, t_v = _rgb_to_hsv01(tr, tg, tb)
    two_pi = 2.0 * math.pi
    p_vs, t_vs = p_v * p_s, t_v * t_s
    hsv_sum = jnp.sum(
        jnp.abs(p_vs * jnp.cos(p_h * two_pi) - t_vs * jnp.cos(t_h * two_pi))
        + jnp.abs(p_vs * jnp.sin(p_h * two_pi) - t_vs * jnp.sin(t_h * two_pi))
        + jnp.abs(p_v - t_v), axis=(1, 2))

    dot = pr * tr + pg * tg + pb * tb
    p_norm = jnp.sqrt(pr * pr + pg * pg + pb * pb)
    t_norm = jnp.sqrt(tr * tr + tg * tg + tb * tb)
    cos_sum = jnp.sum(dot / (jnp.maximum(p_norm, 1e-8) * jnp.maximum(t_norm, 1e-8)),
                      axis=(1, 2))
    return jnp.stack([lab_sum, rgb_sum, hsv_sum, cos_sum], axis=1), p_L, t_L


if __name__ == "__main__":
    key = jax.random.PRNGKey(0)
    k1, k2 = jax.random.split(key)
    B, C, H, W = 2, 3, 32, 32
    pred = jax.random.uniform(k1, (B, C, H, W), dtype=jnp.float32)
    target = jax.random.uniform(k2, (B, C, H, W), dtype=jnp.float32)
    grad_reg = jnp.float32(0.1)

    loss = jax.jit(curl_loss)(pred, target, grad_reg)
    jax.block_until_ready(loss)
    assert loss.shape == ()
    assert bool(jnp.isfinite(loss))

    # Correctness check of the fused Pallas kernel against a pure-JAX reference.
    sums, pred_l, targ_l = _color_loss_pallas(pred, target)
    jax.block_until_ready(sums)
    ref_sums, ref_pred_l, ref_targ_l = _color_loss_reference(pred, target)
    assert bool(jnp.allclose(sums.sum(axis=-1), ref_sums, rtol=2e-3, atol=1e-2))
    assert bool(jnp.allclose(pred_l.reshape(B, H, W), ref_pred_l, rtol=1e-3, atol=1e-3))
    assert bool(jnp.allclose(targ_l.reshape(B, H, W), ref_targ_l, rtol=1e-3, atol=1e-3))

    print("KERNEL_OK")
</pallas_src>

<mosaic_0001>
module attributes {stable_mosaic.version = 11 : i64} {
  func.func @_curl_color_loss_kernel(%arg0: i32, %arg1: i32, %arg2: memref<1x3x8x128xf32, #tpu.memory_space<vmem>>, %arg3: memref<1x3x8x128xf32, #tpu.memory_space<vmem>>, %arg4: memref<1x4x128xf32, #tpu.memory_space<vmem>>, %arg5: memref<1x8x128xf32, #tpu.memory_space<vmem>>, %arg6: memref<1x8x128xf32, #tpu.memory_space<vmem>>) attributes {dimension_semantics = [#tpu.dimension_semantics<parallel>, #tpu.dimension_semantics<arbitrary>], iteration_bounds = array<i64: 2, 1>, scalar_prefetch = 0 : i64, scratch_operands = 0 : i64, tpu.core_type = #tpu.core_type<tc>, window_params = [{transform_indices = @transform_0, window_bounds = array<i64: 1, 3, 8, 128>}, {transform_indices = @transform_1, window_bounds = array<i64: 1, 3, 8, 128>}, {transform_indices = @transform_2, window_bounds = array<i64: 1, 4, 128>}, {transform_indices = @transform_3, window_bounds = array<i64: 1, 8, 128>}, {transform_indices = @transform_4, window_bounds = array<i64: 1, 8, 128>}]} {
    %c0 = arith.constant 0 : index
    %c0_0 = arith.constant 0 : index
    %c0_1 = arith.constant 0 : index
    %c0_2 = arith.constant 0 : index
    %0 = vector.load %arg2[%c0, %c0_0, %c0_1, %c0_2] : memref<1x3x8x128xf32, #tpu.memory_space<vmem>>, vector<1x1x8x128xf32>
    %1 = vector.shape_cast %0 : vector<1x1x8x128xf32> to vector<8x128xf32>
    %c0_3 = arith.constant 0 : index
    %c1 = arith.constant 1 : index
    %c0_4 = arith.constant 0 : index
    %c0_5 = arith.constant 0 : index
    %2 = vector.load %arg2[%c0_3, %c1, %c0_4, %c0_5] : memref<1x3x8x128xf32, #tpu.memory_space<vmem>>, vector<1x1x8x128xf32>
    %3 = vector.shape_cast %2 : vector<1x1x8x128xf32> to vector<8x128xf32>
    %c0_6 = arith.constant 0 : index
    %c2 = arith.constant 2 : index
    %c0_7 = arith.constant 0 : index
    %c0_8 = arith.constant 0 : index
    %4 = vector.load %arg2[%c0_6, %c2, %c0_7, %c0_8] : memref<1x3x8x128xf32, #tpu.memory_space<vmem>>, vector<1x1x8x128xf32>
    %5 = vector.shape_cast %4 : vector<1x1x8x128xf32> to vector<8x128xf32>
    %c0_9 = arith.constant 0 : index
    %c0_10 = arith.constant 0 : index
    %c0_11 = arith.constant 0 : index
    %c0_12 = arith.constant 0 : index
    %6 = vector.load %arg3[%c0_9, %c0_10, %c0_11, %c0_12] : memref<1x3x8x128xf32, #tpu.memory_space<vmem>>, vector<1x1x8x128xf32>
    %7 = vector.shape_cast %6 : vector<1x1x8x128xf32> to vector<8x128xf32>
    %c0_13 = arith.constant 0 : index
    %c1_14 = arith.constant 1 : index
    %c0_15 = arith.constant 0 : index
    %c0_16 = arith.constant 0 : index
    %8 = vector.load %arg3[%c0_13, %c1_14, %c0_15, %c0_16] : memref<1x3x8x128xf32, #tpu.memory_space<vmem>>, vector<1x1x8x128xf32>
    %9 = vector.shape_cast %8 : vector<1x1x8x128xf32> to vector<8x128xf32>
    %c0_17 = arith.constant 0 : index
    %c2_18 = arith.constant 2 : index
    %c0_19 = arith.constant 0 : index
    %c0_20 = arith.constant 0 : index
    %10 = vector.load %arg3[%c0_17, %c2_18, %c0_19, %c0_20] : memref<1x3x8x128xf32, #tpu.memory_space<vmem>>, vector<1x1x8x128xf32>
    %11 = vector.shape_cast %10 : vector<1x1x8x128xf32> to vector<8x128xf32>
    %12 = arith.subf %1, %7 : vector<8x128xf32>
    %13 = math.absf %12 : vector<8x128xf32>
    %14 = arith.subf %3, %9 : vector<8x128xf32>
    %15 = math.absf %14 : vector<8x128xf32>
    %16 = arith.addf %13, %15 : vector<8x128xf32>
    %17 = arith.subf %5, %11 : vector<8x128xf32>
    %18 = math.absf %17 : vector<8x128xf32>
    %19 = arith.addf %16, %18 : vector<8x128xf32>
    %20 = arith.mulf %1, %7 : vector<8x128xf32>
    %21 = arith.mulf %3, %9 : vector<8x128xf32>
    %22 = arith.addf %20, %21 : vector<8x128xf32>
    %23 = arith.mulf %5, %11 : vector<8x128xf32>
    %24 = arith.addf %22, %23 : vector<8x128xf32>
    %25 = arith.mulf %1, %1 : vector<8x128xf32>
    %26 = arith.mulf %3, %3 : vector<8x128xf32>
    %27 = arith.addf %25, %26 : vector<8x128xf32>
    %28 = arith.mulf %5, %5 : vector<8x128xf32>
    %29 = arith.addf %27, %28 : vector<8x128xf32>
    %30 = math.sqrt %29 : vector<8x128xf32>
    %31 = arith.mulf %7, %7 : vector<8x128xf32>
    %32 = arith.mulf %9, %9 : vector<8x128xf32>
    %33 = arith.addf %31, %32 : vector<8x128xf32>
    %34 = arith.mulf %11, %11 : vector<8x128xf32>
    %35 = arith.addf %33, %34 : vector<8x128xf32>
    %36 = math.sqrt %35 : vector<8x128xf32>
    %cst = arith.constant 9.99999993E-9 : f32
    %37 = vector.broadcast %cst : f32 to vector<8x128xf32>
    %38 = arith.maximumf %30, %37 : vector<8x128xf32>
    %cst_21 = arith.constant 9.99999993E-9 : f32
    %39 = vector.broadcast %cst_21 : f32 to vector<8x128xf32>
    %40 = arith.maximumf %36, %39 : vector<8x128xf32>
    %41 = arith.mulf %38, %40 : vector<8x128xf32>
    %42 = arith.divf %24, %41 : vector<8x128xf32>
    %cst_22 = arith.constant 4.045000e-02 : f32
    %43 = vector.broadcast %cst_22 : f32 to vector<8x128xf32>
    %44 = arith.cmpf ole, %1, %43 : vector<8x128xf32>
    %cst_23 = arith.constant 0.0773993805 : f32
    %45 = vector.broadcast %cst_23 : f32 to vector<8x128xf32>
    %46 = arith.mulf %1, %45 : vector<8x128xf32>
    %cst_24 = arith.constant 9.99999974E-5 : f32
    %47 = vector.broadcast %cst_24 : f32 to vector<8x128xf32>
    %48 = arith.maximumf %1, %47 : vector<8x128xf32>
    %cst_25 = arith.constant 5.500000e-02 : f32
    %49 = vector.broadcast %cst_25 : f32 to vector<8x128xf32>
    %50 = arith.addf %48, %49 : vector<8x128xf32>
    %cst_26 = arith.constant 0.947867274 : f32
    %51 = vector.broadcast %cst_26 : f32 to vector<8x128xf32>
    %52 = arith.mulf %50, %51 : vector<8x128xf32>
    %cst_27 = arith.constant 2.400000e+00 : f32
    %53 = vector.broadcast %cst_27 : f32 to vector<8x128xf32>
    %54 = math.powf %52, %53 : vector<8x128xf32>
    %55 = arith.select %44, %46, %54 : vector<8x128xi1>, vector<8x128xf32>
    %cst_28 = arith.constant 4.045000e-02 : f32
    %56 = vector.broadcast %cst_28 : f32 to vector<8x128xf32>
    %57 = arith.cmpf ole, %3, %56 : vector<8x128xf32>
    %cst_29 = arith.constant 0.0773993805 : f32
    %58 = vector.broadcast %cst_29 : f32 to vector<8x128xf32>
    %59 = arith.mulf %3, %58 : vector<8x128xf32>
    %cst_30 = arith.constant 9.99999974E-5 : f32
    %60 = vector.broadcast %cst_30 : f32 to vector<8x128xf32>
    %61 = arith.maximumf %3, %60 : vector<8x128xf32>
    %cst_31 = arith.constant 5.500000e-02 : f32
    %62 = vector.broadcast %cst_31 : f32 to vector<8x128xf32>
    %63 = arith.addf %61, %62 : vector<8x128xf32>
    %cst_32 = arith.constant 0.947867274 : f32
    %64 = vector.broadcast %cst_32 : f32 to vector<8x128xf32>
    %65 = arith.mulf %63, %64 : vector<8x128xf32>
    %cst_33 = arith.constant 2.400000e+00 : f32
    %66 = vector.broadcast %cst_33 : f32 to vector<8x128xf32>
    %67 = math.powf %65, %66 : vector<8x128xf32>
    %68 = arith.select %57, %59, %67 : vector<8x128xi1>, vector<8x128xf32>
    %cst_34 = arith.constant 4.045000e-02 : f32
    %69 = vector.broadcast %cst_34 : f32 to vector<8x128xf32>
    %70 = arith.cmpf ole, %5, %69 : vector<8x128xf32>
    %cst_35 = arith.constant 0.0773993805 : f32
    %71 = vector.broadcast %cst_35 : f32 to vector<8x128xf32>
    %72 = arith.mulf %5, %71 : vector<8x128xf32>
    %cst_36 = arith.constant 9.99999974E-5 : f32
    %73 = vector.broadcast %cst_36 : f32 to vector<8x128xf32>
    %74 = arith.maximumf %5, %73 : vector<8x128xf32>
    %cst_37 = arith.constant 5.500000e-02 : f32
    %75 = vector.broadcast %cst_37 : f32 to vector<8x128xf32>
    %76 = arith.addf %74, %75 : vector<8x128xf32>
    %cst_38 = arith.constant 0.947867274 : f32
    %77 = vector.broadcast %cst_38 : f32 to vector<8x128xf32>
    %78 = arith.mulf %76, %77 : vector<8x128xf32>
    %cst_39 = arith.constant 2.400000e+00 : f32
    %79 = vector.broadcast %cst_39 : f32 to vector<8x128xf32>
    %80 = math.powf %78, %79 : vector<8x128xf32>
    %81 = arith.select %70, %72, %80 : vector<8x128xi1>, vector<8x128xf32>
    %cst_40 = arith.constant 4.124530e-01 : f32
    %82 = vector.broadcast %cst_40 : f32 to vector<8x128xf32>
    %83 = arith.mulf %82, %55 : vector<8x128xf32>
    %cst_41 = arith.constant 3.575800e-01 : f32
    %84 = vector.broadcast %cst_41 : f32 to vector<8x128xf32>
    %85 = arith.mulf %84, %68 : vector<8x128xf32>
    %86 = arith.addf %83, %85 : vector<8x128xf32>
    %cst_42 = arith.constant 1.804230e-01 : f32
    %87 = vector.broadcast %cst_42 : f32 to vector<8x128xf32>
    %88 = arith.mulf %87, %81 : vector<8x128xf32>
    %89 = arith.addf %86, %88 : vector<8x128xf32>
    %cst_43 = arith.constant 2.126710e-01 : f32
    %90 = vector.broadcast %cst_43 : f32 to vector<8x128xf32>
    %91 = arith.mulf %90, %55 : vector<8x128xf32>
    %cst_44 = arith.constant 7.151600e-01 : f32
    %92 = vector.broadcast %cst_44 : f32 to vector<8x128xf32>
    %93 = arith.mulf %92, %68 : vector<8x128xf32>
    %94 = arith.addf %91, %93 : vector<8x128xf32>
    %cst_45 = arith.constant 7.216900e-02 : f32
    %95 = vector.broadcast %cst_45 : f32 to vector<8x128xf32>
    %96 = arith.mulf %95, %81 : vector<8x128xf32>
    %97 = arith.addf %94, %96 : vector<8x128xf32>
    %cst_46 = arith.constant 1.933400e-02 : f32
    %98 = vector.broadcast %cst_46 : f32 to vector<8x128xf32>
    %99 = arith.mulf %98, %55 : vector<8x128xf32>
    %cst_47 = arith.constant 1.191930e-01 : f32
    %100 = vector.broadcast %cst_47 : f32 to vector<8x128xf32>
    %101 = arith.mulf %100, %68 : vector<8x128xf32>
    %102 = arith.addf %99, %101 : vector<8x128xf32>
    %cst_48 = arith.constant 9.502270e-01 : f32
    %103 = vector.broadcast %cst_48 : f32 to vector<8x128xf32>
    %104 = arith.mulf %103, %81 : vector<8x128xf32>
    %105 = arith.addf %102, %104 : vector<8x128xf32>
    %cst_49 = arith.constant 1.05212653 : f32
    %106 = vector.broadcast %cst_49 : f32 to vector<8x128xf32>
    %107 = arith.mulf %89, %106 : vector<8x128xf32>
    %cst_50 = arith.constant 0.918481112 : f32
    %108 = vector.broadcast %cst_50 : f32 to vector<8x128xf32>
    %109 = arith.mulf %105, %108 : vector<8x128xf32>
    %cst_51 = arith.constant 0.00885645207 : f32
    %110 = vector.broadcast %cst_51 : f32 to vector<8x128xf32>
    %111 = arith.cmpf ogt, %107, %110 : vector<8x128xf32>
    %cst_52 = arith.constant 9.99999974E-5 : f32
    %112 = vector.broadcast %cst_52 : f32 to vector<8x128xf32>
    %113 = arith.maximumf %107, %112 : vector<8x128xf32>
    %cst_53 = arith.constant 0.333333343 : f32
    %114 = vector.broadcast %cst_53 : f32 to vector<8x128xf32>
    %115 = math.powf %113, %114 : vector<8x128xf32>
    %cst_54 = arith.constant 7.7870369 : f32
    %116 = vector.broadcast %cst_54 : f32 to vector<8x128xf32>
    %117 = arith.mulf %107, %116 : vector<8x128xf32>
    %cst_55 = arith.constant 0.137931034 : f32
    %118 = vector.broadcast %cst_55 : f32 to vector<8x128xf32>
    %119 = arith.addf %117, %118 : vector<8x128xf32>
    %120 = arith.select %111, %115, %119 : vector<8x128xi1>, vector<8x128xf32>
    %cst_56 = arith.constant 0.00885645207 : f32
    %121 = vector.broadcast %cst_56 : f32 to vector<8x128xf32>
    %122 = arith.cmpf ogt, %97, %121 : vector<8x128xf32>
    %cst_57 = arith.constant 9.99999974E-5 : f32
    %123 = vector.broadcast %cst_57 : f32 to vector<8x128xf32>
    %124 = arith.maximumf %97, %123 : vector<8x128xf32>
    %cst_58 = arith.constant 0.333333343 : f32
    %125 = vector.broadcast %cst_58 : f32 to vector<8x128xf32>
    %126 = math.powf %124, %125 : vector<8x128xf32>
    %cst_59 = arith.constant 7.7870369 : f32
    %127 = vector.broadcast %cst_59 : f32 to vector<8x128xf32>
    %128 = arith.mulf %97, %127 : vector<8x128xf32>
    %cst_60 = arith.constant 0.137931034 : f32
    %129 = vector.broadcast %cst_60 : f32 to vector<8x128xf32>
    %130 = arith.addf %128, %129 : vector<8x128xf32>
    %131 = arith.select %122, %126, %130 : vector<8x128xi1>, vector<8x128xf32>
    %cst_61 = arith.constant 0.00885645207 : f32
    %132 = vector.broadcast %cst_61 : f32 to vector<8x128xf32>
    %133 = arith.cmpf ogt, %109, %132 : vector<8x128xf32>
    %cst_62 = arith.constant 9.99999974E-5 : f32
    %134 = vector.broadcast %cst_62 : f32 to vector<8x128xf32>
    %135 = arith.maximumf %109, %134 : vector<8x128xf32>
    %cst_63 = arith.constant 0.333333343 : f32
    %136 = vector.broadcast %cst_63 : f32 to vector<8x128xf32>
    %137 = math.powf %135, %136 : vector<8x128xf32>
    %cst_64 = arith.constant 7.7870369 : f32
    %138 = vector.broadcast %cst_64 : f32 to vector<8x128xf32>
    %139 = arith.mulf %109, %138 : vector<8x128xf32>
    %cst_65 = arith.constant 0.137931034 : f32
    %140 = vector.broadcast %cst_65 : f32 to vector<8x128xf32>
    %141 = arith.addf %139, %140 : vector<8x128xf32>
    %142 = arith.select %133, %137, %141 : vector<8x128xi1>, vector<8x128xf32>
    %cst_66 = arith.constant 1.160000e+02 : f32
    %143 = vector.broadcast %cst_66 : f32 to vector<8x128xf32>
    %144 = arith.mulf %143, %131 : vector<8x128xf32>
    %cst_67 = arith.constant 1.600000e+01 : f32
    %145 = vector.broadcast %cst_67 : f32 to vector<8x128xf32>
    %146 = arith.subf %144, %145 : vector<8x128xf32>
    %147 = arith.subf %120, %131 : vector<8x128xf32>
    %cst_68 = arith.constant 5.000000e+02 : f32
    %148 = vector.broadcast %cst_68 : f32 to vector<8x128xf32>
    %149 = arith.mulf %148, %147 : vector<8x128xf32>
    %150 = arith.subf %131, %142 : vector<8x128xf32>
    %cst_69 = arith.constant 2.000000e+02 : f32
    %151 = vector.broadcast %cst_69 : f32 to vector<8x128xf32>
    %152 = arith.mulf %151, %150 : vector<8x128xf32>
    %cst_70 = arith.constant 0.00999999977 : f32
    %153 = vector.broadcast %cst_70 : f32 to vector<8x128xf32>
    %154 = arith.mulf %146, %153 : vector<8x128xf32>
    %cst_71 = arith.constant 0.000000e+00 : f32
    %cst_72 = arith.constant 1.000000e+00 : f32
    %155 = vector.broadcast %cst_71 : f32 to vector<8x128xf32>
    %156 = arith.maximumf %155, %154 : vector<8x128xf32>
    %157 = vector.broadcast %cst_72 : f32 to vector<8x128xf32>
    %158 = arith.minimumf %157, %156 : vector<8x128xf32>
    %cst_73 = arith.constant 0.0090909088 : f32
    %159 = vector.broadcast %cst_73 : f32 to vector<8x128xf32>
    %160 = arith.mulf %149, %159 : vector<8x128xf32>
    %cst_74 = arith.constant 1.000000e+00 : f32
    %161 = vector.broadcast %cst_74 : f32 to vector<8x128xf32>
    %162 = arith.addf %160, %161 : vector<8x128xf32>
    %cst_75 = arith.constant 5.000000e-01 : f32
    %163 = vector.broadcast %cst_75 : f32 to vector<8x128xf32>
    %164 = arith.mulf %162, %163 : vector<8x128xf32>
    %cst_76 = arith.constant 0.000000e+00 : f32
    %cst_77 = arith.constant 1.000000e+00 : f32
    %165 = vector.broadcast %cst_76 : f32 to vector<8x128xf32>
    %166 = arith.maximumf %165, %164 : vector<8x128xf32>
    %167 = vector.broadcast %cst_77 : f32 to vector<8x128xf32>
    %168 = arith.minimumf %167, %166 : vector<8x128xf32>
    %cst_78 = arith.constant 0.0090909088 : f32
    %169 = vector.broadcast %cst_78 : f32 to vector<8x128xf32>
    %170 = arith.mulf %152, %169 : vector<8x128xf32>
    %cst_79 = arith.constant 1.000000e+00 : f32
    %171 = vector.broadcast %cst_79 : f32 to vector<8x128xf32>
    %172 = arith.addf %170, %171 : vector<8x128xf32>
    %cst_80 = arith.constant 5.000000e-01 : f32
    %173 = vector.broadcast %cst_80 : f32 to vector<8x128xf32>
    %174 = arith.mulf %172, %173 : vector<8x128xf32>
    %cst_81 = arith.constant 0.000000e+00 : f32
    %cst_82 = arith.constant 1.000000e+00 : f32
    %175 = vector.broadcast %cst_81 : f32 to vector<8x128xf32>
    %176 = arith.maximumf %175, %174 : vector<8x128xf32>
    %177 = vector.broadcast %cst_82 : f32 to vector<8x128xf32>
    %178 = arith.minimumf %177, %176 : vector<8x128xf32>
    %cst_83 = arith.constant 4.045000e-02 : f32
    %179 = vector.broadcast %cst_83 : f32 to vector<8x128xf32>
    %180 = arith.cmpf ole, %7, %179 : vector<8x128xf32>
    %cst_84 = arith.constant 0.0773993805 : f32
    %181 = vector.broadcast %cst_84 : f32 to vector<8x128xf32>
    %182 = arith.mulf %7, %181 : vector<8x128xf32>
    %cst_85 = arith.constant 9.99999974E-5 : f32
    %183 = vector.broadcast %cst_85 : f32 to vector<8x128xf32>
    %184 = arith.maximumf %7, %183 : vector<8x128xf32>
    %cst_86 = arith.constant 5.500000e-02 : f32
    %185 = vector.broadcast %cst_86 : f32 to vector<8x128xf32>
    %186 = arith.addf %184, %185 : vector<8x128xf32>
    %cst_87 = arith.constant 0.947867274 : f32
    %187 = vector.broadcast %cst_87 : f32 to vector<8x128xf32>
    %188 = arith.mulf %186, %187 : vector<8x128xf32>
    %cst_88 = arith.constant 2.400000e+00 : f32
    %189 = vector.broadcast %cst_88 : f32 to vector<8x128xf32>
    %190 = math.powf %188, %189 : vector<8x128xf32>
    %191 = arith.select %180, %182, %190 : vector<8x128xi1>, vector<8x128xf32>
    %cst_89 = arith.constant 4.045000e-02 : f32
    %192 = vector.broadcast %cst_89 : f32 to vector<8x128xf32>
    %193 = arith.cmpf ole, %9, %192 : vector<8x128xf32>
    %cst_90 = arith.constant 0.0773993805 : f32
    %194 = vector.broadcast %cst_90 : f32 to vector<8x128xf32>
    %195 = arith.mulf %9, %194 : vector<8x128xf32>
    %cst_91 = arith.constant 9.99999974E-5 : f32
    %196 = vector.broadcast %cst_91 : f32 to vector<8x128xf32>
    %197 = arith.maximumf %9, %196 : vector<8x128xf32>
    %cst_92 = arith.constant 5.500000e-02 : f32
    %198 = vector.broadcast %cst_92 : f32 to vector<8x128xf32>
    %199 = arith.addf %197, %198 : vector<8x128xf32>
    %cst_93 = arith.constant 0.947867274 : f32
    %200 = vector.broadcast %cst_93 : f32 to vector<8x128xf32>
    %201 = arith.mulf %199, %200 : vector<8x128xf32>
    %cst_94 = arith.constant 2.400000e+00 : f32
    %202 = vector.broadcast %cst_94 : f32 to vector<8x128xf32>
    %203 = math.powf %201, %202 : vector<8x128xf32>
    %204 = arith.select %193, %195, %203 : vector<8x128xi1>, vector<8x128xf32>
    %cst_95 = arith.constant 4.045000e-02 : f32
    %205 = vector.broadcast %cst_95 : f32 to vector<8x128xf32>
    %206 = arith.cmpf ole, %11, %205 : vector<8x128xf32>
    %cst_96 = arith.constant 0.0773993805 : f32
    %207 = vector.broadcast %cst_96 : f32 to vector<8x128xf32>
    %208 = arith.mulf %11, %207 : vector<8x128xf32>
    %cst_97 = arith.constant 9.99999974E-5 : f32
    %209 = vector.broadcast %cst_97 : f32 to vector<8x128xf32>
    %210 = arith.maximumf %11, %209 : vector<8x128xf32>
    %cst_98 = arith.constant 5.500000e-02 : f32
    %211 = vector.broadcast %cst_98 : f32 to vector<8x128xf32>
    %212 = arith.addf %210, %211 : vector<8x128xf32>
    %cst_99 = arith.constant 0.947867274 : f32
    %213 = vector.broadcast %cst_99 : f32 to vector<8x128xf32>
    %214 = arith.mulf %212, %213 : vector<8x128xf32>
    %cst_100 = arith.constant 2.400000e+00 : f32
    %215 = vector.broadcast %cst_100 : f32 to vector<8x128xf32>
    %216 = math.powf %214, %215 : vector<8x128xf32>
    %217 = arith.select %206, %208, %216 : vector<8x128xi1>, vector<8x128xf32>
    %cst_101 = arith.constant 4.124530e-01 : f32
    %218 = vector.broadcast %cst_101 : f32 to vector<8x128xf32>
    %219 = arith.mulf %218, %191 : vector<8x128xf32>
    %cst_102 = arith.constant 3.575800e-01 : f32
    %220 = vector.broadcast %cst_102 : f32 to vector<8x128xf32>
    %221 = arith.mulf %220, %204 : vector<8x128xf32>
    %222 = arith.addf %219, %221 : vector<8x128xf32>
    %cst_103 = arith.constant 1.804230e-01 : f32
    %223 = vector.broadcast %cst_103 : f32 to vector<8x128xf32>
    %224 = arith.mulf %223, %217 : vector<8x128xf32>
    %225 = arith.addf %222, %224 : vector<8x128xf32>
    %cst_104 = arith.constant 2.126710e-01 : f32
    %226 = vector.broadcast %cst_104 : f32 to vector<8x128xf32>
    %227 = arith.mulf %226, %191 : vector<8x128xf32>
    %cst_105 = arith.constant 7.151600e-01 : f32
    %228 = vector.broadcast %cst_105 : f32 to vector<8x128xf32>
    %229 = arith.mulf %228, %204 : vector<8x128xf32>
    %230 = arith.addf %227, %229 : vector<8x128xf32>
    %cst_106 = arith.constant 7.216900e-02 : f32
    %231 = vector.broadcast %cst_106 : f32 to vector<8x128xf32>
    %232 = arith.mulf %231, %217 : vector<8x128xf32>
    %233 = arith.addf %230, %232 : vector<8x128xf32>
    %cst_107 = arith.constant 1.933400e-02 : f32
    %234 = vector.broadcast %cst_107 : f32 to vector<8x128xf32>
    %235 = arith.mulf %234, %191 : vector<8x128xf32>
    %cst_108 = arith.constant 1.191930e-01 : f32
    %236 = vector.broadcast %cst_108 : f32 to vector<8x128xf32>
    %237 = arith.mulf %236, %204 : vector<8x128xf32>
    %238 = arith.addf %235, %237 : vector<8x128xf32>
    %cst_109 = arith.constant 9.502270e-01 : f32
    %239 = vector.broadcast %cst_109 : f32 to vector<8x128xf32>
    %240 = arith.mulf %239, %217 : vector<8x128xf32>
    %241 = arith.addf %238, %240 : vector<8x128xf32>
    %cst_110 = arith.constant 1.05212653 : f32
    %242 = vector.broadcast %cst_110 : f32 to vector<8x128xf32>
    %243 = arith.mulf %225, %242 : vector<8x128xf32>
    %cst_111 = arith.constant 0.918481112 : f32
    %244 = vector.broadcast %cst_111 : f32 to vector<8x128xf32>
    %245 = arith.mulf %241, %244 : vector<8x128xf32>
    %cst_112 = arith.constant 0.00885645207 : f32
    %246 = vector.broadcast %cst_112 : f32 to vector<8x128xf32>
    %247 = arith.cmpf ogt, %243, %246 : vector<8x128xf32>
    %cst_113 = arith.constant 9.99999974E-5 : f32
    %248 = vector.broadcast %cst_113 : f32 to vector<8x128xf32>
    %249 = arith.maximumf %243, %248 : vector<8x128xf32>
    %cst_114 = arith.constant 0.333333343 : f32
    %250 = vector.broadcast %cst_114 : f32 to vector<8x128xf32>
    %251 = math.powf %249, %250 : vector<8x128xf32>
    %cst_115 = arith.constant 7.7870369 : f32
    %252 = vector.broadcast %cst_115 : f32 to vector<8x128xf32>
    %253 = arith.mulf %243, %252 : vector<8x128xf32>
    %cst_116 = arith.constant 0.137931034 : f32
    %254 = vector.broadcast %cst_116 : f32 to vector<8x128xf32>
    %255 = arith.addf %253, %254 : vector<8x128xf32>
    %256 = arith.select %247, %251, %255 : vector<8x128xi1>, vector<8x128xf32>
    %cst_117 = arith.constant 0.00885645207 : f32
    %257 = vector.broadcast %cst_117 : f32 to vector<8x128xf32>
    %258 = arith.cmpf ogt, %233, %257 : vector<8x128xf32>
    %cst_118 = arith.constant 9.99999974E-5 : f32
    %259 = vector.broadcast %cst_118 : f32 to vector<8x128xf32>
    %260 = arith.maximumf %233, %259 : vector<8x128xf32>
    %cst_119 = arith.constant 0.333333343 : f32
    %261 = vector.broadcast %cst_119 : f32 to vector<8x128xf32>
    %262 = math.powf %260, %261 : vector<8x128xf32>
    %cst_120 = arith.constant 7.7870369 : f32
    %263 = vector.broadcast %cst_120 : f32 to vector<8x128xf32>
    %264 = arith.mulf %233, %263 : vector<8x128xf32>
    %cst_121 = arith.constant 0.137931034 : f32
    %265 = vector.broadcast %cst_121 : f32 to vector<8x128xf32>
    %266 = arith.addf %264, %265 : vector<8x128xf32>
    %267 = arith.select %258, %262, %266 : vector<8x128xi1>, vector<8x128xf32>
    %cst_122 = arith.constant 0.00885645207 : f32
    %268 = vector.broadcast %cst_122 : f32 to vector<8x128xf32>
    %269 = arith.cmpf ogt, %245, %268 : vector<8x128xf32>
    %cst_123 = arith.constant 9.99999974E-5 : f32
    %270 = vector.broadcast %cst_123 : f32 to vector<8x128xf32>
    %271 = arith.maximumf %245, %270 : vector<8x128xf32>
    %cst_124 = arith.constant 0.333333343 : f32
    %272 = vector.broadcast %cst_124 : f32 to vector<8x128xf32>
    %273 = math.powf %271, %272 : vector<8x128xf32>
    %cst_125 = arith.constant 7.7870369 : f32
    %274 = vector.broadcast %cst_125 : f32 to vector<8x128xf32>
    %275 = arith.mulf %245, %274 : vector<8x128xf32>
    %cst_126 = arith.constant 0.137931034 : f32
    %276 = vector.broadcast %cst_126 : f32 to vector<8x128xf32>
    %277 = arith.addf %275, %276 : vector<8x128xf32>
    %278 = arith.select %269, %273, %277 : vector<8x128xi1>, vector<8x128xf32>
    %cst_127 = arith.constant 1.160000e+02 : f32
    %279 = vector.broadcast %cst_127 : f32 to vector<8x128xf32>
    %280 = arith.mulf %279, %267 : vector<8x128xf32>
    %cst_128 = arith.constant 1.600000e+01 : f32
    %281 = vector.broadcast %cst_128 : f32 to vector<8x128xf32>
    %282 = arith.subf %280, %281 : vector<8x128xf32>
    %283 = arith.subf %256, %267 : vector<8x128xf32>
    %cst_129 = arith.constant 5.000000e+02 : f32
    %284 = vector.broadcast %cst_129 : f32 to vector<8x128xf32>
    %285 = arith.mulf %284, %283 : vector<8x128xf32>
    %286 = arith.subf %267, %278 : vector<8x128xf32>
    %cst_130 = arith.constant 2.000000e+02 : f32
    %287 = vector.broadcast %cst_130 : f32 to vector<8x128xf32>
    %288 = arith.mulf %287, %286 : vector<8x128xf32>
    %cst_131 = arith.constant 0.00999999977 : f32
    %289 = vector.broadcast %cst_131 : f32 to vector<8x128xf32>
    %290 = arith.mulf %282, %289 : vector<8x128xf32>
    %cst_132 = arith.constant 0.000000e+00 : f32
    %cst_133 = arith.constant 1.000000e+00 : f32
    %291 = vector.broadcast %cst_132 : f32 to vector<8x128xf32>
    %292 = arith.maximumf %291, %290 : vector<8x128xf32>
    %293 = vector.broadcast %cst_133 : f32 to vector<8x128xf32>
    %294 = arith.minimumf %293, %292 : vector<8x128xf32>
    %cst_134 = arith.constant 0.0090909088 : f32
    %295 = vector.broadcast %cst_134 : f32 to vector<8x128xf32>
    %296 = arith.mulf %285, %295 : vector<8x128xf32>
    %cst_135 = arith.constant 1.000000e+00 : f32
    %297 = vector.broadcast %cst_135 : f32 to vector<8x128xf32>
    %298 = arith.addf %296, %297 : vector<8x128xf32>
    %cst_136 = arith.constant 5.000000e-01 : f32
    %299 = vector.broadcast %cst_136 : f32 to vector<8x128xf32>
    %300 = arith.mulf %298, %299 : vector<8x128xf32>
    %cst_137 = arith.constant 0.000000e+00 : f32
    %cst_138 = arith.constant 1.000000e+00 : f32
    %301 = vector.broadcast %cst_137 : f32 to vector<8x128xf32>
    %302 = arith.maximumf %301, %300 : vector<8x128xf32>
    %303 = vector.broadcast %cst_138 : f32 to vector<8x128xf32>
    %304 = arith.minimumf %303, %302 : vector<8x128xf32>
    %cst_139 = arith.constant 0.0090909088 : f32
    %305 = vector.broadcast %cst_139 : f32 to vector<8x128xf32>
    %306 = arith.mulf %288, %305 : vector<8x128xf32>
    %cst_140 = arith.constant 1.000000e+00 : f32
    %307 = vector.broadcast %cst_140 : f32 to vector<8x128xf32>
    %308 = arith.addf %306, %307 : vector<8x128xf32>
    %cst_141 = arith.constant 5.000000e-01 : f32
    %309 = vector.broadcast %cst_141 : f32 to vector<8x128xf32>
    %310 = arith.mulf %308, %309 : vector<8x128xf32>
    %cst_142 = arith.constant 0.000000e+00 : f32
    %cst_143 = arith.constant 1.000000e+00 : f32
    %311 = vector.broadcast %cst_142 : f32 to vector<8x128xf32>
    %312 = arith.maximumf %311, %310 : vector<8x128xf32>
    %313 = vector.broadcast %cst_143 : f32 to vector<8x128xf32>
    %314 = arith.minimumf %313, %312 : vector<8x128xf32>
    %315 = arith.subf %158, %294 : vector<8x128xf32>
    %316 = math.absf %315 : vector<8x128xf32>
    %317 = arith.subf %168, %304 : vector<8x128xf32>
    %318 = math.absf %317 : vector<8x128xf32>
    %319 = arith.addf %316, %318 : vector<8x128xf32>
    %320 = arith.subf %178, %314 : vector<8x128xf32>
    %321 = math.absf %320 : vector<8x128xf32>
    %322 = arith.addf %319, %321 : vector<8x128xf32>
    %cst_144 = arith.constant 9.99999971E-10 : f32
    %cst_145 = arith.constant 1.000000e+00 : f32
    %323 = vector.broadcast %cst_144 : f32 to vector<8x128xf32>
    %324 = arith.maximumf %323, %1 : vector<8x128xf32>
    %325 = vector.broadcast %cst_145 : f32 to vector<8x128xf32>
    %326 = arith.minimumf %325, %324 : vector<8x128xf32>
    %cst_146 = arith.constant 9.99999971E-10 : f32
    %cst_147 = arith.constant 1.000000e+00 : f32
    %327 = vector.broadcast %cst_146 : f32 to vector<8x128xf32>
    %328 = arith.maximumf %327, %3 : vector<8x128xf32>
    %329 = vector.broadcast %cst_147 : f32 to vector<8x128xf32>
    %330 = arith.minimumf %329, %328 : vector<8x128xf32>
    %cst_148 = arith.constant 9.99999971E-10 : f32
    %cst_149 = arith.constant 1.000000e+00 : f32
    %331 = vector.broadcast %cst_148 : f32 to vector<8x128xf32>
    %332 = arith.maximumf %331, %5 : vector<8x128xf32>
    %333 = vector.broadcast %cst_149 : f32 to vector<8x128xf32>
    %334 = arith.minimumf %333, %332 : vector<8x128xf32>
    %335 = arith.maximumf %330, %334 : vector<8x128xf32>
    %336 = arith.maximumf %326, %335 : vector<8x128xf32>
    %337 = arith.minimumf %330, %334 : vector<8x128xf32>
    %338 = arith.minimumf %326, %337 : vector<8x128xf32>
    %339 = arith.subf %336, %338 : vector<8x128xf32>
    %cst_150 = arith.constant 9.99999971E-10 : f32
    %340 = vector.broadcast %cst_150 : f32 to vector<8x128xf32>
    %341 = arith.maximumf %336, %340 : vector<8x128xf32>
    %342 = arith.divf %339, %341 : vector<8x128xf32>
    %cst_151 = arith.constant 0.000000e+00 : f32
    %343 = vector.broadcast %cst_151 : f32 to vector<8x128xf32>
    %344 = arith.cmpf ogt, %339, %343 : vector<8x128xf32>
    %cst_152 = arith.constant 1.000000e+00 : f32
    %345 = vector.broadcast %cst_152 : f32 to vector<8x128xf32>
    %346 = arith.select %344, %339, %345 : vector<8x128xi1>, vector<8x128xf32>
    %347 = arith.subf %330, %334 : vector<8x128xf32>
    %348 = arith.divf %347, %346 : vector<8x128xf32>
    %cst_153 = arith.constant 0.166666672 : f32
    %349 = vector.broadcast %cst_153 : f32 to vector<8x128xf32>
    %350 = arith.mulf %348, %349 : vector<8x128xf32>
    %351 = math.floor %350 : vector<8x128xf32>
    %cst_154 = arith.constant 6.000000e+00 : f32
    %352 = vector.broadcast %cst_154 : f32 to vector<8x128xf32>
    %353 = arith.mulf %352, %351 : vector<8x128xf32>
    %354 = arith.subf %348, %353 : vector<8x128xf32>
    %355 = arith.subf %334, %326 : vector<8x128xf32>
    %356 = arith.divf %355, %346 : vector<8x128xf32>
    %cst_155 = arith.constant 2.000000e+00 : f32
    %357 = vector.broadcast %cst_155 : f32 to vector<8x128xf32>
    %358 = arith.addf %356, %357 : vector<8x128xf32>
    %359 = arith.subf %326, %330 : vector<8x128xf32>
    %360 = arith.divf %359, %346 : vector<8x128xf32>
    %cst_156 = arith.constant 4.000000e+00 : f32
    %361 = vector.broadcast %cst_156 : f32 to vector<8x128xf32>
    %362 = arith.addf %360, %361 : vector<8x128xf32>
    %363 = arith.cmpf oeq, %336, %326 : vector<8x128xf32>
    %364 = arith.cmpf oeq, %336, %330 : vector<8x128xf32>
    %365 = arith.select %364, %358, %362 : vector<8x128xi1>, vector<8x128xf32>
    %366 = arith.select %363, %354, %365 : vector<8x128xi1>, vector<8x128xf32>
    %cst_157 = arith.constant 0.000000e+00 : f32
    %367 = vector.broadcast %cst_157 : f32 to vector<8x128xf32>
    %368 = arith.cmpf ogt, %339, %367 : vector<8x128xf32>
    %cst_158 = arith.constant 0.166666672 : f32
    %369 = vector.broadcast %cst_158 : f32 to vector<8x128xf32>
    %370 = arith.mulf %366, %369 : vector<8x128xf32>
    %cst_159 = arith.constant 0.000000e+00 : f32
    %371 = vector.broadcast %cst_159 : f32 to vector<8x128xf32>
    %372 = arith.select %368, %370, %371 : vector<8x128xi1>, vector<8x128xf32>
    %cst_160 = arith.constant 0.000000e+00 : f32
    %cst_161 = arith.constant 1.000000e+00 : f32
    %373 = vector.broadcast %cst_160 : f32 to vector<8x128xf32>
    %374 = arith.maximumf %373, %372 : vector<8x128xf32>
    %375 = vector.broadcast %cst_161 : f32 to vector<8x128xf32>
    %376 = arith.minimumf %375, %374 : vector<8x128xf32>
    %cst_162 = arith.constant 0.000000e+00 : f32
    %cst_163 = arith.constant 1.000000e+00 : f32
    %377 = vector.broadcast %cst_162 : f32 to vector<8x128xf32>
    %378 = arith.maximumf %377, %342 : vector<8x128xf32>
    %379 = vector.broadcast %cst_163 : f32 to vector<8x128xf32>
    %380 = arith.minimumf %379, %378 : vector<8x128xf32>
    %cst_164 = arith.constant 0.000000e+00 : f32
    %cst_165 = arith.constant 1.000000e+00 : f32
    %381 = vector.broadcast %cst_164 : f32 to vector<8x128xf32>
    %382 = arith.maximumf %381, %336 : vector<8x128xf32>
    %383 = vector.broadcast %cst_165 : f32 to vector<8x128xf32>
    %384 = arith.minimumf %383, %382 : vector<8x128xf32>
    %cst_166 = arith.constant 9.99999971E-10 : f32
    %cst_167 = arith.constant 1.000000e+00 : f32
    %385 = vector.broadcast %cst_166 : f32 to vector<8x128xf32>
    %386 = arith.maximumf %385, %7 : vector<8x128xf32>
    %387 = vector.broadcast %cst_167 : f32 to vector<8x128xf32>
    %388 = arith.minimumf %387, %386 : vector<8x128xf32>
    %cst_168 = arith.constant 9.99999971E-10 : f32
    %cst_169 = arith.constant 1.000000e+00 : f32
    %389 = vector.broadcast %cst_168 : f32 to vector<8x128xf32>
    %390 = arith.maximumf %389, %9 : vector<8x128xf32>
    %391 = vector.broadcast %cst_169 : f32 to vector<8x128xf32>
    %392 = arith.minimumf %391, %390 : vector<8x128xf32>
    %cst_170 = arith.constant 9.99999971E-10 : f32
    %cst_171 = arith.constant 1.000000e+00 : f32
    %393 = vector.broadcast %cst_170 : f32 to vector<8x128xf32>
    %394 = arith.maximumf %393, %11 : vector<8x128xf32>
    %395 = vector.broadcast %cst_171 : f32 to vector<8x128xf32>
    %396 = arith.minimumf %395, %394 : vector<8x128xf32>
    %397 = arith.maximumf %392, %396 : vector<8x128xf32>
    %398 = arith.maximumf %388, %397 : vector<8x128xf32>
    %399 = arith.minimumf %392, %396 : vector<8x128xf32>
    %400 = arith.minimumf %388, %399 : vector<8x128xf32>
    %401 = arith.subf %398, %400 : vector<8x128xf32>
    %cst_172 = arith.constant 9.99999971E-10 : f32
    %402 = vector.broadcast %cst_172 : f32 to vector<8x128xf32>
    %403 = arith.maximumf %398, %402 : vector<8x128xf32>
    %404 = arith.divf %401, %403 : vector<8x128xf32>
    %cst_173 = arith.constant 0.000000e+00 : f32
    %405 = vector.broadcast %cst_173 : f32 to vector<8x128xf32>
    %406 = arith.cmpf ogt, %401, %405 : vector<8x128xf32>
    %cst_174 = arith.constant 1.000000e+00 : f32
    %407 = vector.broadcast %cst_174 : f32 to vector<8x128xf32>
    %408 = arith.select %406, %401, %407 : vector<8x128xi1>, vector<8x128xf32>
    %409 = arith.subf %392, %396 : vector<8x128xf32>
    %410 = arith.divf %409, %408 : vector<8x128xf32>
    %cst_175 = arith.constant 0.166666672 : f32
    %411 = vector.broadcast %cst_175 : f32 to vector<8x128xf32>
    %412 = arith.mulf %410, %411 : vector<8x128xf32>
    %413 = math.floor %412 : vector<8x128xf32>
    %cst_176 = arith.constant 6.000000e+00 : f32
    %414 = vector.broadcast %cst_176 : f32 to vector<8x128xf32>
    %415 = arith.mulf %414, %413 : vector<8x128xf32>
    %416 = arith.subf %410, %415 : vector<8x128xf32>
    %417 = arith.subf %396, %388 : vector<8x128xf32>
    %418 = arith.divf %417, %408 : vector<8x128xf32>
    %cst_177 = arith.constant 2.000000e+00 : f32
    %419 = vector.broadcast %cst_177 : f32 to vector<8x128xf32>
    %420 = arith.addf %418, %419 : vector<8x128xf32>
    %421 = arith.subf %388, %392 : vector<8x128xf32>
    %422 = arith.divf %421, %408 : vector<8x128xf32>
    %cst_178 = arith.constant 4.000000e+00 : f32
    %423 = vector.broadcast %cst_178 : f32 to vector<8x128xf32>
    %424 = arith.addf %422, %423 : vector<8x128xf32>
    %425 = arith.cmpf oeq, %398, %388 : vector<8x128xf32>
    %426 = arith.cmpf oeq, %398, %392 : vector<8x128xf32>
    %427 = arith.select %426, %420, %424 : vector<8x128xi1>, vector<8x128xf32>
    %428 = arith.select %425, %416, %427 : vector<8x128xi1>, vector<8x128xf32>
    %cst_179 = arith.constant 0.000000e+00 : f32
    %429 = vector.broadcast %cst_179 : f32 to vector<8x128xf32>
    %430 = arith.cmpf ogt, %401, %429 : vector<8x128xf32>
    %cst_180 = arith.constant 0.166666672 : f32
    %431 = vector.broadcast %cst_180 : f32 to vector<8x128xf32>
    %432 = arith.mulf %428, %431 : vector<8x128xf32>
    %cst_181 = arith.constant 0.000000e+00 : f32
    %433 = vector.broadcast %cst_181 : f32 to vector<8x128xf32>
    %434 = arith.select %430, %432, %433 : vector<8x128xi1>, vector<8x128xf32>
    %cst_182 = arith.constant 0.000000e+00 : f32
    %cst_183 = arith.constant 1.000000e+00 : f32
    %435 = vector.broadcast %cst_182 : f32 to vector<8x128xf32>
    %436 = arith.maximumf %435, %434 : vector<8x128xf32>
    %437 = vector.broadcast %cst_183 : f32 to vector<8x128xf32>
    %438 = arith.minimumf %437, %436 : vector<8x128xf32>
    %cst_184 = arith.constant 0.000000e+00 : f32
    %cst_185 = arith.constant 1.000000e+00 : f32
    %439 = vector.broadcast %cst_184 : f32 to vector<8x128xf32>
    %440 = arith.maximumf %439, %404 : vector<8x128xf32>
    %441 = vector.broadcast %cst_185 : f32 to vector<8x128xf32>
    %442 = arith.minimumf %441, %440 : vector<8x128xf32>
    %cst_186 = arith.constant 0.000000e+00 : f32
    %cst_187 = arith.constant 1.000000e+00 : f32
    %443 = vector.broadcast %cst_186 : f32 to vector<8x128xf32>
    %444 = arith.maximumf %443, %398 : vector<8x128xf32>
    %445 = vector.broadcast %cst_187 : f32 to vector<8x128xf32>
    %446 = arith.minimumf %445, %444 : vector<8x128xf32>
    %447 = arith.mulf %384, %380 : vector<8x128xf32>
    %448 = arith.mulf %446, %442 : vector<8x128xf32>
    %cst_188 = arith.constant 6.28318548 : f32
    %449 = vector.broadcast %cst_188 : f32 to vector<8x128xf32>
    %450 = arith.mulf %376, %449 : vector<8x128xf32>
    %451 = math.cos %450 : vector<8x128xf32>
    %452 = arith.mulf %447, %451 : vector<8x128xf32>
    %cst_189 = arith.constant 6.28318548 : f32
    %453 = vector.broadcast %cst_189 : f32 to vector<8x128xf32>
    %454 = arith.mulf %438, %453 : vector<8x128xf32>
    %455 = math.cos %454 : vector<8x128xf32>
    %456 = arith.mulf %448, %455 : vector<8x128xf32>
    %457 = arith.subf %452, %456 : vector<8x128xf32>
    %458 = math.absf %457 : vector<8x128xf32>
    %cst_190 = arith.constant 6.28318548 : f32
    %459 = vector.broadcast %cst_190 : f32 to vector<8x128xf32>
    %460 = arith.mulf %376, %459 : vector<8x128xf32>
    %461 = math.sin %460 : vector<8x128xf32>
    %462 = arith.mulf %447, %461 : vector<8x128xf32>
    %cst_191 = arith.constant 6.28318548 : f32
    %463 = vector.broadcast %cst_191 : f32 to vector<8x128xf32>
    %464 = arith.mulf %438, %463 : vector<8x128xf32>
    %465 = math.sin %464 : vector<8x128xf32>
    %466 = arith.mulf %448, %465 : vector<8x128xf32>
    %467 = arith.subf %462, %466 : vector<8x128xf32>
    %468 = math.absf %467 : vector<8x128xf32>
    %469 = arith.addf %458, %468 : vector<8x128xf32>
    %470 = arith.subf %384, %446 : vector<8x128xf32>
    %471 = math.absf %470 : vector<8x128xf32>
    %472 = arith.addf %469, %471 : vector<8x128xf32>
    %cst_192 = arith.constant dense<0.000000e+00> : vector<128xf32>
    %473 = vector.multi_reduction <add>, %322, %cst_192 [0] : vector<8x128xf32> to vector<128xf32>
    %474 = vector.shape_cast %473 : vector<128xf32> to vector<1x128xf32>
    %cst_193 = arith.constant dense<0.000000e+00> : vector<128xf32>
    %475 = vector.multi_reduction <add>, %19, %cst_193 [0] : vector<8x128xf32> to vector<128xf32>
    %476 = vector.shape_cast %475 : vector<128xf32> to vector<1x128xf32>
    %cst_194 = arith.constant dense<0.000000e+00> : vector<128xf32>
    %477 = vector.multi_reduction <add>, %472, %cst_194 [0] : vector<8x128xf32> to vector<128xf32>
    %478 = vector.shape_cast %477 : vector<128xf32> to vector<1x128xf32>
    %cst_195 = arith.constant dense<0.000000e+00> : vector<128xf32>
    %479 = vector.multi_reduction <add>, %42, %cst_195 [0] : vector<8x128xf32> to vector<128xf32>
    %480 = vector.shape_cast %479 : vector<128xf32> to vector<1x128xf32>
    %481 = tpu.concatenate %474, %476, %478, %480 in 0 : vector<1x128xf32>, vector<1x128xf32>, vector<1x128xf32>, vector<1x128xf32> -> vector<4x128xf32>
    %c0_i32 = arith.constant 0 : i32
    %482 = arith.cmpi eq, %arg1, %c0_i32 : i32
    %483 = arith.extui %482 : i1 to i32
    %c0_i32_196 = arith.constant 0 : i32
    %484 = arith.cmpi ne, %483, %c0_i32_196 : i32
    scf.if %484 {
      %cst_209 = arith.constant 0.000000e+00 : f32
      %493 = vector.broadcast %cst_209 : f32 to vector<1x4x128xf32>
      %c0_210 = arith.constant 0 : index
      %c0_211 = arith.constant 0 : index
      %c0_212 = arith.constant 0 : index
      %494 = vector.load %arg4[%c0_210, %c0_211, %c0_212] : memref<1x4x128xf32, #tpu.memory_space<vmem>>, vector<1x4x128xf32>
      tpu.vector_store %arg4[%c0_210, %c0_211, %c0_212], %493 {strides = array<i32>} : memref<1x4x128xf32, #tpu.memory_space<vmem>>, vector<1x4x128xf32>,
    } else {
    }
    %c0_197 = arith.constant 0 : index
    %c0_198 = arith.constant 0 : index
    %c0_199 = arith.constant 0 : index
    %485 = vector.load %arg4[%c0_197, %c0_198, %c0_199] : memref<1x4x128xf32, #tpu.memory_space<vmem>>, vector<1x4x128xf32>
    %486 = vector.shape_cast %481 : vector<4x128xf32> to vector<1x4x128xf32>
    %487 = arith.addf %485, %486 : vector<1x4x128xf32>
    %c0_200 = arith.constant 0 : index
    %c0_201 = arith.constant 0 : index
    %c0_202 = arith.constant 0 : index
    %488 = vector.load %arg4[%c0_200, %c0_201, %c0_202] : memref<1x4x128xf32, #tpu.memory_space<vmem>>, vector<1x4x128xf32>
    tpu.vector_store %arg4[%c0_200, %c0_201, %c0_202], %487 {strides = array<i32>} : memref<1x4x128xf32, #tpu.memory_space<vmem>>, vector<1x4x128xf32>,
    %489 = vector.shape_cast %158 : vector<8x128xf32> to vector<1x8x128xf32>
    %c0_203 = arith.constant 0 : index
    %c0_204 = arith.constant 0 : index
    %c0_205 = arith.constant 0 : index
    %490 = vector.load %arg5[%c0_203, %c0_204, %c0_205] : memref<1x8x128xf32, #tpu.memory_space<vmem>>, vector<1x8x128xf32>
    tpu.vector_store %arg5[%c0_203, %c0_204, %c0_205], %489 {strides = array<i32>} : memref<1x8x128xf32, #tpu.memory_space<vmem>>, vector<1x8x128xf32>,
    %491 = vector.shape_cast %294 : vector<8x128xf32> to vector<1x8x128xf32>
    %c0_206 = arith.constant 0 : index
    %c0_207 = arith.constant 0 : index
    %c0_208 = arith.constant 0 : index
    %492 = vector.load %arg6[%c0_206, %c0_207, %c0_208] : memref<1x8x128xf32, #tpu.memory_space<vmem>>, vector<1x8x128xf32>
    tpu.vector_store %arg6[%c0_206, %c0_207, %c0_208], %491 {strides = array<i32>} : memref<1x8x128xf32, #tpu.memory_space<vmem>>, vector<1x8x128xf32>,
    return
  }
  func.func @transform_0(%arg0: i32, %arg1: i32) -> (i32, i32, i32, i32) {
    %c0_i32 = arith.constant 0 : i32
    %c0_i32_0 = arith.constant 0 : i32
    %c0_i32_1 = arith.constant 0 : i32
    return %arg0, %c0_i32, %arg1, %c0_i32_0 : i32, i32, i32, i32
  }
  func.func @transform_1(%arg0: i32, %arg1: i32) -> (i32, i32, i32, i32) {
    %c0_i32 = arith.constant 0 : i32
    %c0_i32_0 = arith.constant 0 : i32
    %c0_i32_1 = arith.constant 0 : i32
    return %arg0, %c0_i32, %arg1, %c0_i32_0 : i32, i32, i32, i32
  }
  func.func @transform_2(%arg0: i32, %arg1: i32) -> (i32, i32, i32) {
    %c0_i32 = arith.constant 0 : i32
    %c0_i32_0 = arith.constant 0 : i32
    %c0_i32_1 = arith.constant 0 : i32
    return %arg0, %c0_i32, %c0_i32_0 : i32, i32, i32
  }
  func.func @transform_3(%arg0: i32, %arg1: i32) -> (i32, i32, i32) {
    %c0_i32 = arith.constant 0 : i32
    %c0_i32_0 = arith.constant 0 : i32
    return %arg0, %arg1, %c0_i32 : i32, i32, i32
  }
  func.func @transform_4(%arg0: i32, %arg1: i32) -> (i32, i32, i32) {
    %c0_i32 = arith.constant 0 : i32
    %c0_i32_0 = arith.constant 0 : i32
    return %arg0, %arg1, %c0_i32 : i32, i32, i32
  }
}

</mosaic_0001>

<bundles_post_ra>
// kernel: curl_loss.1
= control target key start
LH: loop header
LB: loop body
LE: loop exit
PB: predicated region body
PF: predicated region fallthrough
CT: control target
= control target key end

     0   :  { %s1680_s15 = smov 0   ;;  %s1682_s16 = smov 0   ;;  %s2434_s0 = inlined_call_operand.vmem [shape: f32[2,3,8,128], index: 0, kind: input, shape index: {}]   ;;  %s2435_s1 = inlined_call_operand.vmem [shape: f32[2,3,8,128], index: 1, kind: input, shape index: {}]   ;;  %s2436_s2 = inlined_call_operand.vmem [shape: f32[2,4,128], index: 2, kind: output, shape index: {0}]   ;;  %s2437_s3 = inlined_call_operand.vmem [shape: f32[2,8,128], index: 3, kind: output, shape index: {1}]   ;;  %s2438_s4 = inlined_call_operand.vmem [shape: f32[2,8,128], index: 4, kind: output, shape index: {2}]  }
   0x1   :  { %s1684_s17 = smov 0  }
   0x2 LB: > { %s27_s18 = sadd.s32 1, %s1642_s16  ;;  %p1220_p0 = scmp.ge.s32.totalorder %s1646_s17, 1  ;;  %s1646_s17 = sphi %s1684_s17, %s15_s17   ;;  %s1642_s16 = sphi %s1682_s16, %s2464_s16   ;;  %s1638_s15 = sphi %s1680_s15, %s2463_s15  }
   0x3   : > { %p29_p1 = scmp.ge.s32.totalorder %s27_s18, 2  ;;  %p203_p2 = scmp.lt.s32.totalorder %s1646_s17, 3 }
   0x5   : > { %s2466_s18 = smov (%p29_p1, %s27_s18), 0  ;;  %p204_p3 = pnand %p1220_p0, %p203_p2 }
   0x6   : > { %p253_p4 = scmp.lt.s32.totalorder (!%p204_p3), %s1638_s15, 1 }
   0x7   : > { %207 = sbr.rel (%p204_p3) target bundleno = 255 (0xff), region = 28 }
   0xe   : > { %s2468_s15 = smov (!%p253_p4, %s1638_s15), 1 }
   0xf   : > { %s1250_s19 = smul.u32 24, %s2468_s15  ;;  %s1224_s26 = sshll.u32 %s2468_s15, 3 }
  0x10   : > { %s279_s29 = scalar_lea.vmem %s2437_s3, %s1224_s26  ;;  %s286_s6 = scalar_lea.vmem %s2438_s4, %s1224_s26 }
  0x11   : > { %s260_s22 = scalar_lea.vmem %s2434_s0, %s1250_s19  ;;  %s268_s25 = scalar_lea.vmem %s2435_s1, %s1250_s19 }
  0x12   : > { %v1707_v0 = vld [vmem:[%s260_s22] sm:$0xff]  ;;  %v1709_v1 = vld [vmem:[%s260_s22 + $0x8] sm:$0xff]  ;;  %v1711_v2 = vld [vmem:[%s260_s22 + $0x10] sm:$0xff]  ;;  %s1223_s7 = sshll.u32 %s2468_s15, 2 }
  0x13   : > { %v1713_v3 = vld [vmem:[%s268_s25] sm:$0xff]  ;;  %v1715_v4 = vld [vmem:[%s268_s25 + $0x8] sm:$0xff]  ;;  %v1717_v5 = vld [vmem:[%s268_s25 + $0x10] sm:$0xff]  ;;  %v310_v6 = vmul.f32 %v1707_v0, %v1707_v0  ;;  %v311_v7 = vmul.f32 %v1709_v1, %v1709_v1  ;;  %v313_v8 = vmul.f32 %v1711_v2, %v1711_v2  ;;  %v341_v26 = vmax.f32 %v1707_v0, 0.0001  ;;  %s2347_s10 = scalar_lea.vmem %s2436_s2, %s1223_s7 }
  0x14   : > { %v297_v9 = vsub.f32 %v1707_v0, %v1713_v3  ;;  %v299_v10 = vsub.f32 %v1709_v1, %v1715_v4  ;;  %v302_v11 = vsub.f32 %v1711_v2, %v1717_v5  ;;  %v305_v12 = vmul.f32 %v1713_v3, %v1707_v0 }
  0x15   : > { %v306_v13 = vmul.f32 %v1715_v4, %v1709_v1  ;;  %v308_v14 = vmul.f32 %v1717_v5, %v1711_v2  ;;  %v312_v15 = vadd.f32 %v311_v7, %v310_v6  ;;  %v322_v16 = vmul.f32 %v1713_v3, %v1713_v3 }
  0x16   : > { %v298_v17 = vand.u32 2147483647, %v297_v9  ;;  %v300_v18 = vand.u32 2147483647, %v299_v10  ;;  %v303_v19 = vand.u32 2147483647, %v302_v11  ;;  %v323_v20 = vmul.f32 %v1715_v4, %v1715_v4 }
  0x17   : > { %v307_v21 = vadd.f32 %v306_v13, %v305_v12  ;;  %v314_v22 = vadd.f32 %v313_v8, %v312_v15  ;;  %v325_v23 = vmul.f32 %v1717_v5, %v1717_v5  ;;  %v342_v30 = vadd.f32 0.055, %v341_v26 }
  0x18   : > { %v301_v24 = vadd.f32 %v300_v18, %v298_v17  ;;  %v324_v25 = vadd.f32 %v323_v20, %v322_v16  ;;  %v348_v31 = vmax.f32 %v1709_v1, 0.0001  ;;  %v355_v34 = vmax.f32 %v1711_v2, 0.0001 }
  0x19   : > { %v1744_v27 = vadd.f32 %v308_v14, %v307_v21  ;;  %1554 = vrsqrt.f32 %v314_v22  ;;  %v1749_v32 = vmul.f32 0.9478673, %v342_v30  ;;  %v416_v38 = vmax.f32 %v1713_v3, 0.0001 }
  0x1a   : > { %v1746_v28 = vadd.f32 %v303_v19, %v301_v24  ;;  %v326_v29 = vadd.f32 %v325_v23, %v324_v25  ;;  %v349_v33 = vadd.f32 0.055, %v348_v31  ;;  %v356_v37 = vadd.f32 0.055, %v355_v34 }
  0x1b   : > { %v1255_v35 = vand.u32 2147483647, %v1749_v32  ;;  %vm317_vm0 = vcmp.eq.f32.partialorder %v314_v22, inf  ;;  %v320_v39 = vand.u32 2147483648, %v314_v22  ;;  %v417_v43 = vadd.f32 0.055, %v416_v38 }
  0x1c   : > { %1556 = vrsqrt.f32 %v326_v29  ;;  %v1753_v36 = vmul.f32 0.9478673, %v349_v33  ;;  %v1757_v42 = vmul.f32 0.9478673, %v356_v37  ;;  %v423_v44 = vmax.f32 %v1715_v4, 0.0001 }
  0x1d   : > { %1558 = vlog2.f32 %v1255_v35  ;;  %vm319_vm1 = vcmp.eq.f32.partialorder %v314_v22, 0.0  ;;  %vm329_vm2 = vcmp.eq.f32.partialorder %v326_v29, inf  ;;  %v332_v49 = vand.u32 2147483648, %v326_v29 }
  0x1e   : > { %v1281_v40 = vand.u32 2147483647, %v1753_v36  ;;  %v1307_v46 = vand.u32 2147483647, %v1757_v42  ;;  %v1763_v50 = vmul.f32 0.9478673, %v417_v43  ;;  %vm1272_vm8 = vcmp.ne.f32.partialorder %v1749_v32, %v1749_v32 }
  0x1f   : > { %v424_v51 = vadd.f32 0.055, %v423_v44  ;;  %vm331_vm3 = vcmp.eq.f32.partialorder %v326_v29, 0.0  ;;  %v430_v63 = vmax.f32 %v1717_v5, 0.0001  ;;  %vm1259_vm4 = vcmp.lt.f32.partialorder %v1749_v32, 0 }
  0x20   : > { %1560 = vlog2.f32 %v1281_v40  ;;  %v1387_v54 = vand.u32 2147483647, %v1763_v50  ;;  %v497_v7 = vmax.f32 %v1707_v0, 1e-09  ;;  %v499_v10 = vmax.f32 %v1709_v1, 1e-09 }
  0x21   : > { %1562 = vlog2.f32 %v1307_v46  ;;  %v1768_v57 = vmul.f32 0.9478673, %v424_v51  ;;  %v431_v9 = vadd.f32 0.055, %v430_v63  ;;  %v501_v11 = vmax.f32 %v1711_v2, 1e-09 }
  0x22   : > { %1564 = vlog2.f32 %v1387_v54  ;;  %v1780_v12 = vmul.f32 0.07739938, %v1707_v0  ;;  %v1783_v13 = vmul.f32 0.07739938, %v1709_v1  ;;  %v1786_v15 = vmul.f32 0.07739938, %v1711_v2 }
  0x23   : > { %v1555_v41 = vpop.eup %1554  ;;  %v1413_v61 = vand.u32 2147483647, %v1768_v57  ;;  %v1788_v16 = vmul.f32 0.9478673, %v431_v9  ;;  %v1790_v17 = vmin.f32 %v499_v10, 1.0  ;;  %v1792_v18 = vmin.f32 %v501_v11, 1.0 }
  0x24   : > { %v316_v45 = vmul.f32 %v1555_v41, %v314_v22  ;;  %vm1260_vm5 = vcmp.eq.f32.partialorder %v1749_v32, 0  ;;  %v1796_v20 = vmin.f32 %v497_v7, 1.0  ;;  %vm1261_vm6 = vcmp.eq.f32.partialorder %v1749_v32, 1065353216 }
  0x25   : > { %1566 = vlog2.f32 %v1413_v61  ;;  %vm1799_vm7 = vcmp.eq.f32.partialorder %v1255_v35, 2139095040  ;;  %v1439_v23 = vand.u32 2147483647, %v1788_v16  ;;  %vm339_vm9 = vcmp.le.f32.partialorder %v1707_v0, 0.04045 }
  0x26   : > { %v1557_v47 = vpop.eup %1556  ;;  %v318_v48 = vsel %vm317_vm0, %v314_v22, %v316_v45  ;;  %vm1285_vm10 = vcmp.lt.f32.partialorder %v1753_v36, 0  ;;  %vm1286_vm11 = vcmp.eq.f32.partialorder %v1753_v36, 0  ;;  %v503_v24 = vmax.f32 %v1790_v17, %v1792_v18 }
  0x27   : > { %v321_v52 = vsel %vm319_vm1, %v320_v39, %v318_v48  ;;  %v328_v53 = vmul.f32 %v1557_v47, %v326_v29  ;;  %v1559_v59 = vpop.eup %1558  ;;  %v505_v25 = vmin.f32 %v1790_v17, %v1792_v18  ;;  %vm1298_vm12 = vcmp.ne.f32.partialorder %v1753_v36, %v1753_v36 }
  0x28   : > { %v334_v56 = vmax.f32 %v321_v52, 1e-08  ;;  %v1257_v62 = vmul.f32 2.4, %v1559_v59  ;;  %v520_v30 = vsub.f32 %v1792_v18, %v1796_v20  ;;  %v1823_v33 = vmax.f32 %v1796_v20, %v503_v24 }
  0x29   : > { %v330_v55 = vsel %vm329_vm2, %v326_v29, %v328_v53  ;;  %v513_v29 = vsub.f32 %v1790_v17, %v1792_v18  ;;  %v506_v34 = vmin.f32 %v1796_v20, %v505_v25  ;;  %vm1829_vm15 = vcmp.eq.f32.partialorder %v1281_v40, 2139095040 }
  0x2a   : > { %v333_v58 = vsel %vm331_vm3, %v332_v49, %v330_v55  ;;  %v1561_v8 = vpop.eup %1560  ;;  %1568 = vpow2.f32 %v1257_v62  ;;  %vm1311_vm0 = vcmp.lt.f32.partialorder %v1757_v42, 0  ;;  %v523_v37 = vsub.f32 %v1796_v20, %v1790_v17 }
  0x2b   : > { %v335_v60 = vmax.f32 %v333_v58, 1e-08  ;;  %v1283_v14 = vmul.f32 2.4, %v1561_v8  ;;  %v1563_v19 = vpop.eup %1562  ;;  %v1838_v39 = vsub.f32 %v1823_v33, %v506_v34  ;;  %v508_v41 = vmax.f32 %v1823_v33, 1e-09 }
  0x2c   : > { %v1309_v22 = vmul.f32 2.4, %v1563_v19  ;;  %v1565_v26 = vpop.eup %1564  ;;  %vm1313_vm3 = vcmp.eq.f32.partialorder %v1757_v42, 1065353216  ;;  %vm1324_vm14 = vcmp.ne.f32.partialorder %v1757_v42, %v1757_v42  ;;  %vm527_vm1 = vcmp.eq.f32.partialorder %v1823_v33, %v1790_v17 }
  0x2d   : > { %v336_v6 = vmul.f32 %v335_v60, %v334_v56  ;;  %v1389_v31 = vmul.f32 2.4, %v1565_v26  ;;  %v540_v44 = vmax.f32 %v1715_v4, 1e-09  ;;  %vm353_vm13 = vcmp.le.f32.partialorder %v1711_v2, 0.04045 }
  0x2e   : > { %vm511_vm2 = vcmp.gt.f32.partialorder %v1838_v39, 0.0  ;;  %v542_v48 = vmax.f32 %v1717_v5, 1e-09 }
  0x2f   : > { %1570 = vrcp.f32 %v336_v6  ;;  %v1567_v38 = vpop.eup %1566  ;;  %v512_v52 = vsel %vm511_vm2, %v1838_v39, 1.0  ;;  %v1882_v62 = vmin.f32 %v540_v44, 1.0 }
  0x30   : > { %1572 = vpow2.f32 %v1283_v14  ;;  %v1415_v43 = vmul.f32 2.4, %v1567_v38  ;;  %v1884_v63 = vmin.f32 %v542_v48, 1.0 }
  0x31   : > { %1574 = vpow2.f32 %v1309_v22 }
  0x32   : > { %1576 = vlog2.f32 %v1439_v23 }
  0x33   : > { %1578 = vpow2.f32 %v1389_v31  ;;  %v544_v31 = vmax.f32 %v1882_v62, %v1884_v63 }
  0x34   : > { %v1569_v40 = vpop.eup %1568  ;;  %1580 = vrcp.f32 %v508_v41 }
  0x35   : > { %v1265_v47 = vsel %vm1259_vm4, 2143289344, %v1569_v40  ;;  %1582 = vpow2.f32 %v1415_v43  ;;  %vm1866_vm4 = vcmp.eq.f32.partialorder %v1307_v46, 2139095040 }
  0x36   : > { %v1266_v51 = vsel %vm1260_vm5, 0, %v1265_v47  ;;  %1584 = vrcp.f32 %v512_v52  ;;  %vm1391_vm5 = vcmp.lt.f32.partialorder %v1763_v50, 0 }
  0x37   : > { %v1271_v55 = vsel %vm1799_vm7, 2139095040, %v1266_v51  ;;  %vm1392_vm7 = vcmp.eq.f32.partialorder %v1763_v50, 0 }
  0x38   : > { %v1275_v58 = vsel %vm1272_vm8, 2143289344, %v1271_v55  ;;  %vm1893_vm8 = vcmp.eq.f32.partialorder %v1387_v54, 2139095040 }
  0x39   : > { %v1571_v45 = vpop.eup %1570  ;;  %v1276_v46 = vsel %vm1261_vm6, 1065353216, %v1275_v58  ;;  %vm1404_vm6 = vcmp.ne.f32.partialorder %v1763_v50, %v1763_v50 }
  0x3a   : > { %v1855_v49 = vmul.f32 %v1571_v45, %v1744_v27  ;;  %v1573_v53 = vpop.eup %1572  ;;  %v538_v27 = vmax.f32 %v1713_v3, 1e-09  ;;  %v345_v7 = vsel %vm339_vm9, %v1780_v12, %v1276_v46  ;;  %vm2448_vm9 = vcmp.eq.f32.partialorder %v1753_v36, 1065353216 }
  0x3b   : > { %v1291_v59 = vsel %vm1285_vm10, 2143289344, %v1573_v53  ;;  %v1575_v6 = vpop.eup %1574  ;;  %vm1417_vm10 = vcmp.lt.f32.partialorder %v1768_v57, 0  ;;  %v360_v11 = vmul.f32 0.412453, %v345_v7  ;;  %v365_v19 = vmul.f32 0.212671, %v345_v7 }
  0x3c   : > { %v1292_v60 = vsel %vm1286_vm11, 0, %v1291_v59  ;;  %v1577_v9 = vpop.eup %1576  ;;  %v1317_v10 = vsel %vm1311_vm0, 2143289344, %v1575_v6  ;;  %v1905_v12 = vmin.f32 %v538_v27, 1.0  ;;  %vm2449_vm11 = vcmp.eq.f32.partialorder %v1757_v42, 0 }
  0x3d   : > { %v1297_v8 = vsel %vm1829_vm15, 2139095040, %v1292_v60  ;;  %v1318_v14 = vsel %vm2449_vm11, 0, %v1317_v10  ;;  %v1441_v21 = vmul.f32 2.4, %v1577_v9  ;;  %v1579_v22 = vpop.eup %1578  ;;  %vm2450_vm15 = vcmp.le.f32.partialorder %v1709_v1, 0.04045 }
  0x3e   : > { %v1301_v0 = vsel %vm1298_vm12, 2143289344, %v1297_v8  ;;  %v1323_v25 = vsel %vm1866_vm4, 2139095040, %v1318_v14  ;;  %v370_v26 = vmul.f32 0.019334, %v345_v7  ;;  %v1397_v38 = vsel %vm1391_vm5, 2143289344, %v1579_v22  ;;  %v1581_v41 = vpop.eup %1580 }
  0x3f   : > { %v1302_v54 = vsel %vm2448_vm9, 1065353216, %v1301_v0  ;;  %v1327_v36 = vsel %vm1324_vm14, 2143289344, %v1323_v25  ;;  %v1398_v40 = vsel %vm1392_vm7, 0, %v1397_v38  ;;  %vm1418_vm12 = vcmp.eq.f32.partialorder %v1768_v57, 0  ;;  %v1583_v43 = vpop.eup %1582 }
  0x40   : > { %v352_v24 = vsel %vm2450_vm15, %v1783_v13, %v1302_v54  ;;  %v1328_v1 = vsel %vm1313_vm3, 1065353216, %v1327_v36  ;;  %1586 = vpow2.f32 %v1441_v21  ;;  %v1585_v48 = vpop.eup %1584  ;;  %v1403_v55 = vsel %vm1893_vm8, 2139095040, %v1398_v40 }
  0x41   : > { %v361_v34 = vmul.f32 0.35758, %v352_v24  ;;  %v366_v35 = vmul.f32 0.71516, %v352_v24  ;;  %v371_v13 = vmul.f32 0.119193, %v352_v24  ;;  %v359_v44 = vsel %vm353_vm13, %v1786_v15, %v1328_v1 }
  0x42   : > { %v363_v51 = vmul.f32 0.180423, %v359_v44  ;;  %v368_v52 = vmul.f32 0.072169, %v359_v44  ;;  %v373_v42 = vmul.f32 0.950227, %v359_v44  ;;  %v1934_v56 = vmul.f32 %v1581_v41, %v1838_v39 }
  0x43   : > { %v362_v45 = vadd.f32 %v361_v34, %v360_v11  ;;  %v367_v47 = vadd.f32 %v366_v35, %v365_v19  ;;  %v372_v53 = vadd.f32 %v371_v13, %v370_v26  ;;  %v1939_v27 = vmul.f32 %v1585_v48, %v513_v29 }
  0x44   : > { %v1942_v2 = vmax.f32 %v1905_v12, %v544_v31  ;;  %v1423_v46 = vsel %vm1417_vm10, 2143289344, %v1583_v43  ;;  %vm1393_vm13 = vcmp.eq.f32.partialorder %v1763_v50, 1065353216  ;;  %v521_v60 = vmul.f32 %v1585_v48, %v520_v30 }
  0x45   : > { %v364_v15 = vadd.f32 %v363_v51, %v362_v45  ;;  %v1944_v58 = vadd.f32 %v368_v52, %v367_v47  ;;  %v374_v59 = vadd.f32 %v373_v42, %v372_v53  ;;  %v1407_v29 = vsel %vm1404_vm6, 2143289344, %v1403_v55 }
  0x46   : > { %v524_v7 = vmul.f32 %v1585_v48, %v523_v37  ;;  %v549_v8 = vmax.f32 %v1942_v2, 1e-09  ;;  %vm1966_vm14 = vcmp.eq.f32.partialorder %v1413_v61, 2139095040  ;;  %v1424_v30 = vsel %vm1418_vm12, 0, %v1423_v46 }
  0x47   : > { %v1952_v6 = vmul.f32 1.0521265, %v364_v15  ;;  %v1962_v32 = vmax.f32 %v1944_v58, 0.0001  ;;  %vm414_vm0 = vcmp.le.f32.partialorder %v1713_v3, 0.04045  ;;  %vm1430_vm3 = vcmp.ne.f32.partialorder %v1768_v57, %v1768_v57 }
  0x48   : > { %v415_v37 = vmul.f32 0.07739938, %v1713_v3  ;;  %v1408_v61 = vsel %vm1393_vm13, 1065353216, %v1407_v29  ;;  %v516_v0 = vmul.f32 0.16666667, %v1939_v27  ;;  %v546_v10 = vmin.f32 %v1882_v62, %v1884_v63 }
  0x49   : > { %v1973_v50 = vmax.f32 %v1952_v6, 0.0001  ;;  %v1980_v9 = vand.u32 2147483647, %v1962_v32  ;;  %v1985_v11 = vmul.f32 0.9184811, %v374_v59  ;;  %1588 = vrcp.f32 %v549_v8 }
  0x4a   : > { %v1429_v14 = vsel %vm1966_vm14, 2139095040, %v1424_v30  ;;  %v1587_v19 = vpop.eup %1586  ;;  %v422_v21 = vmul.f32 0.07739938, %v1715_v4  ;;  %vm1419_vm4 = vcmp.eq.f32.partialorder %v1768_v57, 1065353216  ;;  %vm1443_vm5 = vcmp.lt.f32.partialorder %v1788_v16, 0 }
  0x4b   : > { %v1988_v54 = vand.u32 2147483647, %v1973_v50  ;;  %1590 = vlog2.f32 %v1980_v9  ;;  %v420_v22 = vsel %vm414_vm0, %v415_v37, %v1408_v61  ;;  %vm421_vm7 = vcmp.le.f32.partialorder %v1715_v4, 0.04045 }
  0x4c   : > { %vm1444_vm8 = vcmp.eq.f32.partialorder %v1788_v16, 0  ;;  %v1433_v24 = vsel %vm1430_vm3, 2143289344, %v1429_v14  ;;  %vm2006_vm6 = vcmp.eq.f32.partialorder %v1439_v23, 2139095040  ;;  %v517_v26 = vfloor.f32 %v516_v0 }
  0x4d   : > { %1592 = vlog2.f32 %v1988_v54  ;;  %v536_v31 = vmax.f32 %v1823_v33, 0.0  ;;  %v2012_v3 = vmax.f32 %v1985_v11, 0.0001  ;;  %v1434_v36 = vsel %vm1419_vm4, 1065353216, %v1433_v24 }
  0x4e   : > { %v1449_v4 = vsel %vm1443_vm5, 2143289344, %v1587_v19  ;;  %v547_v34 = vmin.f32 %v1905_v12, %v546_v10  ;;  %v427_v35 = vsel %vm421_vm7, %v422_v21, %v1434_v36  ;;  %v435_v57 = vmul.f32 0.412453, %v420_v22 }
  0x4f   : > { %v1450_v38 = vsel %vm1444_vm8, 0, %v1449_v4  ;;  %v2016_v41 = vand.u32 2147483647, %v2012_v3  ;;  %v429_v23 = vmul.f32 0.07739938, %v1717_v5  ;;  %vm1445_vm10 = vcmp.eq.f32.partialorder %v1788_v16, 1065353216 }
  0x50   : > { %vm1456_vm9 = vcmp.ne.f32.partialorder %v1788_v16, %v1788_v16  ;;  %v1455_v1 = vsel %vm2006_vm6, 2139095040, %v1450_v38  ;;  %v436_v13 = vmul.f32 0.35758, %v427_v35  ;;  %v440_v40 = vmul.f32 0.212671, %v420_v22 }
  0x51   : > { %v518_v43 = vmul.f32 6.0, %v517_v26  ;;  %1594 = vlog2.f32 %v2016_v41  ;;  %vm428_vm11 = vcmp.le.f32.partialorder %v1717_v5, 0.04045  ;;  %v2026_v44 = vmin.f32 %v536_v31, 1.0 }
  0x52   : > { %v2029_v45 = vsub.f32 %v1942_v2, %v547_v34  ;;  %v1459_v47 = vsel %vm1456_vm9, 2143289344, %v1455_v1  ;;  %v437_v48 = vadd.f32 %v436_v13, %v435_v57  ;;  %v441_v51 = vmul.f32 0.71516, %v427_v35 }
  0x53   : > { %v445_v52 = vmul.f32 0.019334, %v420_v22  ;;  %v1589_v16 = vpop.eup %1588  ;;  %v1460_v53 = vsel %vm1445_vm10, 1065353216, %v1459_v47  ;;  %v446_v42 = vmul.f32 0.119193, %v427_v35  ;;  %v519_v55 = vsub.f32 %v1939_v27, %v518_v43 }
  0x54   : > { %v522_v15 = vadd.f32 2.0, %v521_v60  ;;  %v434_v46 = vsel %vm428_vm11, %v429_v23, %v1460_v53  ;;  %v442_v29 = vadd.f32 %v441_v51, %v440_v40  ;;  %v525_v8 = vadd.f32 4.0, %v524_v7 }
  0x55   : > { %v1591_v59 = vpop.eup %1590  ;;  %v554_v5 = vsub.f32 %v1882_v62, %v1884_v63  ;;  %v438_v37 = vmul.f32 0.180423, %v434_v46  ;;  %v443_v61 = vmul.f32 0.072169, %v434_v46  ;;  %v447_v0 = vadd.f32 %v446_v42, %v445_v52 }
  0x56   : > { %v1354_v30 = vmul.f32 0.33333334, %v1591_v59  ;;  %v448_v14 = vmul.f32 0.950227, %v434_v46  ;;  %v528_v19 = vsel %vm527_vm1, %v522_v15, %v525_v8  ;;  %vm2439_vm15 = vcmp.gt.f32.partialorder %v2029_v45, 0.0 }
  0x57   : > { %v1593_v18 = vpop.eup %1592  ;;  %v439_v27 = vadd.f32 %v438_v37, %v437_v48  ;;  %v2038_v60 = vadd.f32 %v443_v61, %v442_v29  ;;  %vm2455_vm12 = vcmp.eq.f32.partialorder %v1823_v33, %v1796_v20  ;;  %v2044_v24 = vmul.f32 %v1589_v16, %v2029_v45 }
  0x58   : > { %v1336_v10 = vmul.f32 0.33333334, %v1593_v18  ;;  %1596 = vpow2.f32 %v1354_v30  ;;  %v529_v7 = vsel %vm2455_vm12, %v519_v55, %v528_v19  ;;  %v449_v21 = vadd.f32 %v448_v14, %v447_v0 }
  0x59   : > { %v530_v22 = vmul.f32 0.16666667, %v529_v7  ;;  %v2046_v25 = vmul.f32 1.0521265, %v439_v27  ;;  %v2049_v17 = vmax.f32 %v2038_v60, 0.0001  ;;  %v561_v31 = vsub.f32 %v1884_v63, %v1905_v12 }
  0x5a   : > { %1598 = vpow2.f32 %v1336_v10  ;;  %v534_v26 = vmax.f32 %v1934_v56, 0.0  ;;  %v380_v36 = vmul.f32 7.787037, %v1952_v6  ;;  %v553_v33 = vsel %vm2439_vm15, %v2029_v45, 1.0 }
  0x5b   : > { %v531_v20 = vsel %vm511_vm2, %v530_v22, 0.0  ;;  %v564_v4 = vsub.f32 %v1905_v12, %v1882_v62  ;;  %v1595_v34 = vpop.eup %1594  ;;  %vm1348_vm1 = vcmp.lt.f32.partialorder %v1962_v32, 0.0  ;;  %v386_v56 = vmul.f32 7.787037, %v1944_v58 }
  0x5c   : > { %v2065_v35 = vmax.f32 %v2046_v25, 0.0001  ;;  %1600 = vrcp.f32 %v553_v33  ;;  %vm1330_vm13 = vcmp.lt.f32.partialorder %v1973_v50, 0.0  ;;  %vm1347_vm2 = vcmp.eq.f32.partialorder %v1962_v32, 0.0 }
  0x5d   : > { %v1353_v39 = vand.u32 2147483648, %v1962_v32  ;;  %v1372_v38 = vmul.f32 0.33333334, %v1595_v34  ;;  %v2071_v57 = vand.u32 2147483647, %v2049_v17  ;;  %vm1329_vm14 = vcmp.eq.f32.partialorder %v1973_v50, 0.0 }
  0x5e   : > { %v1335_v23 = vand.u32 2147483648, %v1973_v50  ;;  %v2075_v1 = vmul.f32 0.9184811, %v449_v21  ;;  %v2078_v13 = vand.u32 2147483647, %v2065_v35  ;;  %v535_v40 = vmin.f32 %v534_v26, 1.0 }
  0x5f   : > { %v381_v43 = vadd.f32 0.13793103, %v380_v36  ;;  %vm383_vm0 = vcmp.gt.f32.partialorder %v1944_v58, 0.008856452  ;;  %vm1350_vm3 = vcmp.eq.f32.partialorder %v1980_v9, inf  ;;  %1602 = vpow2.f32 %v1372_v38 }
  0x60   : > { %v392_v47 = vmul.f32 7.787037, %v1985_v11  ;;  %vm1332_vm5 = vcmp.eq.f32.partialorder %v1988_v54, inf  ;;  %vm1339_vm7 = vweird.f32 %v1988_v54  ;;  %vm1357_vm8 = vweird.f32 %v1980_v9 }
  0x61   : > { %1604 = vlog2.f32 %v2078_v13  ;;  %vm1341_vm6 = vcmp.eq.f32.partialorder %v1988_v54, 0.0  ;;  %vm1359_vm10 = vcmp.eq.f32.partialorder %v1980_v9, 0.0  ;;  %v387_v48 = vadd.f32 0.13793103, %v386_v56 }
  0x62   : > { %1606 = vlog2.f32 %v2071_v57  ;;  %v1597_v51 = vpop.eup %1596  ;;  %v1371_v52 = vand.u32 2147483648, %v2012_v3  ;;  %v455_v16 = vmul.f32 7.787037, %v2046_v25  ;;  %v2094_v53 = vmax.f32 %v2075_v1, 0.0001 }
  0x63   : > { %v2097_v42 = vmul.f32 %v2026_v44, %v535_v40  ;;  %v1356_v15 = vor.u32 %v1597_v51, %v1353_v39  ;;  %vm1375_vm11 = vweird.f32 %v2016_v41  ;;  %v2101_v59 = vadd.f32 0.13793103, %v392_v47 }
  0x64   : > { %v1599_v55 = vpop.eup %1598  ;;  %v532_v46 = vmax.f32 %v531_v20, 0.0  ;;  %vm1365_vm12 = vcmp.eq.f32.partialorder %v2012_v3, 0.0  ;;  %vm1377_vm15 = vcmp.eq.f32.partialorder %v2016_v41, 0.0  ;;  %v2106_v8 = vand.u32 2147483647, %v2094_v53 }
  0x65   : > { %v1338_v29 = vor.u32 %v1599_v55, %v1335_v23  ;;  %v1358_v18 = vsel %vm1357_vm8, %v1962_v32, %v1356_v15  ;;  %vm1368_vm9 = vcmp.eq.f32.partialorder %v2016_v41, inf  ;;  %v1467_v30 = vand.u32 2147483648, %v2065_v35 }
  0x66   : > { %v2116_v37 = vmul.f32 7.787037, %v2038_v60  ;;  %v575_v61 = vmax.f32 %v2044_v24, 0.0  ;;  %v1601_v0 = vpop.eup %1600  ;;  %v1361_v14 = vsel %vm1359_vm10, %v1353_v39, %v1358_v18  ;;  %vm389_vm4 = vcmp.gt.f32.partialorder %v1985_v11, 0.008856452 }
  0x67   : > { %v1340_v10 = vsel %vm1339_vm7, %v1973_v50, %v1338_v29  ;;  %v2125_v19 = vadd.f32 0.13793103, %v455_v16  ;;  %1608 = vlog2.f32 %v2106_v8  ;;  %v1362_v7 = vsel %vm1348_vm1, nan, %v1361_v14 }
  0x68   : > { %v1343_v27 = vsel %vm1341_vm6, %v1335_v23, %v1340_v10  ;;  %v533_v21 = vmin.f32 %v532_v46, 1.0  ;;  %vm567_vm8 = vcmp.eq.f32.partialorder %v1942_v2, %v1905_v12  ;;  %v577_v22 = vmax.f32 %v1942_v2, 0.0 }
  0x69   : > { %v1344_v24 = vsel %vm1330_vm13, nan, %v1343_v27  ;;  %v1363_v26 = vsel %vm1347_vm2, 0.0, %v1362_v7  ;;  %v556_v36 = vmul.f32 %v1601_v0, %v554_v5  ;;  %v562_v20 = vmul.f32 %v1601_v0, %v561_v31  ;;  %v1603_v33 = vpop.eup %1602 }
  0x6a   : > { %v1345_v34 = vsel %vm1329_vm14, 0.0, %v1344_v24  ;;  %v1364_v56 = vsel %vm1350_vm3, inf, %v1363_v26  ;;  %v565_v32 = vmul.f32 %v1601_v0, %v564_v4  ;;  %v576_v39 = vmin.f32 %v575_v61, 1.0 }
  0x6b   : > { %v1605_v38 = vpop.eup %1604  ;;  %v1346_v5 = vsel %vm1332_vm5, inf, %v1345_v34  ;;  %v388_v63 = vsel %vm383_vm0, %v1364_v56, %v387_v48  ;;  %v1374_v31 = vor.u32 %v1603_v33, %v1371_v52  ;;  %v557_v23 = vmul.f32 0.16666667, %v556_v36 }
  0x6c   : > { %v1607_v40 = vpop.eup %1606  ;;  %vm2456_vm1 = vcmp.gt.f32.partialorder %v1952_v6, 0.008856452  ;;  %v395_v9 = vmul.f32 116.0, %v388_v63  ;;  %v1468_v47 = vmul.f32 0.33333334, %v1605_v38  ;;  %v563_v51 = vadd.f32 2.0, %v562_v20 }
  0x6d   : > { %v382_v50 = vsel %vm2456_vm1, %v1346_v5, %v381_v43  ;;  %v1376_v4 = vsel %vm1375_vm11, %v2012_v3, %v1374_v31  ;;  %v1486_v54 = vmul.f32 0.33333334, %v1607_v40  ;;  %v558_v55 = vfloor.f32 %v557_v23 }
  0x6e   : > { %v397_v16 = vsub.f32 %v382_v50, %v388_v63  ;;  %v1379_v58 = vsel %vm1377_vm15, %v1371_v52, %v1376_v4  ;;  %v1230_v48 = vadd.f32 -16.0, %v395_v9  ;;  %1610 = vpow2.f32 %v1468_v47 }
  0x6f   : > { %v566_v15 = vadd.f32 4.0, %v565_v32  ;;  %vm2457_vm13 = vcmp.lt.f32.partialorder %v2012_v3, 0.0  ;;  %1612 = vpow2.f32 %v1486_v54  ;;  %v559_v46 = vmul.f32 6.0, %v558_v55 }
  0x70   : > { %v1380_v6 = vsel %vm2457_vm13, nan, %v1379_v58  ;;  %v398_v43 = vmul.f32 500.0, %v397_v16  ;;  %v401_v18 = vmul.f32 0.01, %v1230_v48  ;;  %vm2458_vm2 = vcmp.eq.f32.partialorder %v1942_v2, %v1882_v62 }
  0x71   : > { %v1381_v29 = vsel %vm1365_vm12, 0.0, %v1380_v6  ;;  %v569_v61 = vsel %vm2458_vm2, %v563_v51, %v566_v15  ;;  %v2171_v52 = vmin.f32 %v577_v22, 1.0  ;;  %v1609_v0 = vpop.eup %1608  ;;  %v560_v27 = vsub.f32 %v556_v36, %v559_v46 }
  0x72   : > { %v1382_v10 = vsel %vm1368_vm9, inf, %v1381_v29  ;;  %v404_v14 = vmul.f32 0.009090909, %v398_v43  ;;  %v2175_v7 = vmul.f32 6.2831855, %v533_v21  ;;  %v402_v24 = vmax.f32 %v401_v18, 0.0 }
  0x73   : > { %v394_v3 = vsel %vm389_vm4, %v1382_v10, %v2101_v59  ;;  %vm1462_vm15 = vcmp.lt.f32.partialorder %v2065_v35, 0.0  ;;  %v1504_v26 = vmul.f32 0.33333334, %v1609_v0  ;;  %v2182_v62 = vmul.f32 %v2171_v52, %v576_v39 }
  0x74   : > { %v399_v41 = vsub.f32 %v388_v63, %v394_v3  ;;  %v405_v22 = vadd.f32 1.0, %v404_v14  ;;  %vm1461_vm14 = vcmp.eq.f32.partialorder %v2065_v35, 0.0  ;;  %vm1480_vm0 = vcmp.lt.f32.partialorder %v2049_v17, 0.0 }
  0x75   : > { %v1485_v11 = vand.u32 2147483648, %v2049_v17  ;;  %v570_v59 = vsel %vm567_vm8, %v560_v27, %v569_v61  ;;  %v2195_v21 = vmin.f32 %v402_v24, 1.0  ;;  %vm1464_vm3 = vcmp.eq.f32.partialorder %v2078_v13, inf }
  0x76   : > { %vm1479_vm4 = vcmp.eq.f32.partialorder %v2049_v17, 0.0  ;;  %1614 = vpow2.f32 %v1504_v26  ;;  %v571_v36 = vmul.f32 0.16666667, %v570_v59  ;;  %v582_v20 = vand.u32 2147483647, %v2175_v7 }
  0x77   : > { %v400_v33 = vmul.f32 200.0, %v399_v41  ;;  %vm452_vm5 = vcmp.gt.f32.partialorder %v2046_v25, 0.008856452  ;;  %vm1471_vm7 = vweird.f32 %v2078_v13  ;;  %vm1482_vm6 = vcmp.eq.f32.partialorder %v2071_v57, inf  ;;  %1047 = vst [vmem:[%s279_s29] sm:$0xff] %v2195_v21 }
  0x78   : > { %v467_v12 = vmul.f32 7.787037, %v2075_v1  ;;  %v585_v2 = vand.u32 2139095040, %v2175_v7  ;;  %v406_v34 = vmul.f32 0.5, %v405_v22  ;;  %vm1473_vm10 = vcmp.eq.f32.partialorder %v2078_v13, 0.0  ;;  %v1611_v63 = vpop.eup %1610 }
  0x79   : > { %vm458_vm9 = vcmp.gt.f32.partialorder %v2038_v60, 0.008856452  ;;  %vm2459_vm11 = vcmp.gt.f32.partialorder %v2029_v45, 0.0  ;;  %v1006_v32 = vsub.f32 %v2026_v44, %v2171_v52  ;;  %v409_v39 = vmul.f32 0.009090909, %v400_v33  ;;  %v1613_v23 = vpop.eup %1612 }
  0x7a   : > { %v572_v56 = vsel %vm2459_vm11, %v571_v36, 0.0  ;;  %vm1489_vm12 = vweird.f32 %v2071_v57  ;;  %v586_v5 = vshrl.u32 %v585_v2, 23  ;;  %vm1491_vm8 = vcmp.eq.f32.partialorder %v2071_v57, 0.0 }
  0x7b   : > { %v573_v38 = vmax.f32 %v572_v56, 0.0  ;;  %v462_v31 = vadd.f32 0.13793103, %v2116_v37  ;;  %v589_v45 = vand.u32 8388607, %v582_v20  ;;  %v410_v40 = vadd.f32 1.0, %v409_v39 }
  0x7c   : > { %v1470_v50 = vor.u32 %v1611_v63, %v1467_v30  ;;  %vm1497_vm13 = vcmp.eq.f32.partialorder %v2094_v53, 0.0  ;;  %v1503_v9 = vand.u32 2147483648, %v2094_v53  ;;  %v468_v47 = vadd.f32 0.13793103, %v467_v12 }
  0x7d   : > { %v407_v51 = vmax.f32 %v406_v34, 0.0  ;;  %v1488_v4 = vor.u32 %v1613_v23, %v1485_v11  ;;  %vm1500_vm2 = vcmp.eq.f32.partialorder %v2106_v8, inf  ;;  %v1232_v37 = vadd.s32 4294967169, %v586_v5 }
  0x7e   : > { %v411_v16 = vmul.f32 0.5, %v410_v40  ;;  %v1472_v54 = vsel %vm1471_vm7, %v2065_v35, %v1470_v50  ;;  %vm464_vm11 = vcmp.gt.f32.partialorder %v2075_v1, 0.008856452  ;;  %vm1507_vm1 = vweird.f32 %v2106_v8 }
  0x7f   : > { %v574_v55 = vmin.f32 %v573_v38, 1.0  ;;  %v1475_v58 = vsel %vm1473_vm10, %v1467_v30, %v1472_v54  ;;  %v1490_v48 = vsel %vm1489_vm12, %v2049_v17, %v1488_v4  ;;  %v590_v15 = vor.u32 8388608, %v589_v45 }
  0x80   : > { %v592_v6 = vadd.s32 1, %v1232_v37  ;;  %v412_v43 = vmax.f32 %v411_v16, 0.0  ;;  %v1476_v46 = vsel %vm1462_vm15, nan, %v1475_v58  ;;  %v1493_v29 = vsel %vm1491_vm8, %v1485_v11, %v1490_v48  ;;  %v1615_v18 = vpop.eup %1614 }
  0x81   : > { %vm1509_vm7 = vcmp.eq.f32.partialorder %v2106_v8, 0.0  ;;  %v2240_v61 = vmin.f32 %v407_v51, 1.0  ;;  %v1477_v30 = vsel %vm1461_vm14, 0.0, %v1476_v46  ;;  %v1494_v0 = vsel %vm1480_vm0, nan, %v1493_v29 }
  0x82   : > { %vm593_vm10 = vcmp.gt.s32.totalorder %v592_v6, 0  ;;  %v1478_v10 = vsel %vm1464_vm3, inf, %v1477_v30  ;;  %v1495_v14 = vsel %vm1479_vm4, 0.0, %v1494_v0  ;;  %v1506_v27 = vor.u32 %v1615_v18, %v1503_v9 }
  0x83   : > { %v2250_v3 = vmul.f32 6.2831855, %v574_v55  ;;  %v457_v24 = vsel %vm452_vm5, %v1478_v10, %v2125_v19  ;;  %v1496_v35 = vsel %vm1482_vm6, inf, %v1495_v14  ;;  %v594_v26 = vsel %vm593_vm10, %v592_v6, 0 }
  0x84   : > { %v2257_v41 = vshll.u32 %v590_v15, 8  ;;  %v2259_v22 = vmin.f32 %v412_v43, 1.0  ;;  %v463_v13 = vsel %vm458_vm9, %v1496_v35, %v462_v31  ;;  %v1508_v17 = vsel %vm1507_vm1, %v2094_v53, %v1506_v27 }
  0x85   : > { %v596_v11 = vand.u32 31, %v594_v26  ;;  %v1511_v25 = vsel %vm1509_vm7, %v1503_v9, %v1508_v17  ;;  %v470_v19 = vmul.f32 116.0, %v463_v13  ;;  %v472_v59 = vsub.f32 %v457_v24, %v463_v13 }
  0x86   : > { %v2268_v57 = vshrl.u32 %v594_v26, 5  ;;  %vm2460_vm15 = vcmp.lt.f32.partialorder %v2094_v53, 0.0  ;;  %v1648_v12 = vmov 683565275   ;;  %v690_v2 = vand.u32 2139095040, %v2250_v3 }
  0x87   : > { %v1512_v36 = vsel %vm2460_vm15, nan, %v1511_v25  ;;  %v597_v33 = vsub.s32 32, %v596_v11  ;;  %v599_v60 = vshll.u32 %v1648_v12, %v596_v11  ;;  %v1231_v56 = vadd.f32 -16.0, %v470_v19 }
  0x88   : > { %v1513_v34 = vsel %vm1497_vm13, 0.0, %v1512_v36  ;;  %v473_v39 = vmul.f32 500.0, %v472_v59  ;;  %v1649_v38 = vmov 2475754826   ;;  %v1650_v45 = vmov 2131351028  }
  0x89   : > { %v602_v5 = vshll.u32 %v1649_v38, %v596_v11  ;;  %v1514_v63 = vsel %vm1500_vm2, inf, %v1513_v34  ;;  %v600_v31 = vshrl.u32 %v1649_v38, %v597_v33  ;;  %v603_v23 = vshrl.u32 %v1650_v45, %v597_v33 }
  0x8a   : > { %v605_v40 = vshll.u32 %v1650_v45, %v596_v11  ;;  %v469_v53 = vsel %vm464_vm11, %v1514_v63, %v468_v47  ;;  %v476_v50 = vmul.f32 0.01, %v1231_v56  ;;  %v479_v9 = vmul.f32 0.009090909, %v473_v39 }
  0x8b   : > { %v1651_v51 = vmov 2102212464   ;;  %v474_v37 = vsub.f32 %v463_v13, %v469_v53  ;;  %v598_v8 = vshrl.u32 %v1648_v12, %v597_v33  ;;  %v601_v16 = vor.u32 %v600_v31, %v599_v60 }
  0x8c   : > { %v606_v4 = vshrl.u32 %v1651_v51, %v597_v33  ;;  %v608_v54 = vshll.u32 %v1651_v51, %v596_v11  ;;  %v477_v55 = vmax.f32 %v476_v50, 0.0  ;;  %v480_v58 = vadd.f32 1.0, %v479_v9 }
  0x8d   : > { %v604_v48 = vor.u32 %v603_v23, %v602_v5  ;;  %v1652_v15 = vmov 920167782   ;;  %v475_v1 = vmul.f32 200.0, %v474_v37  ;;  %v1653_v46 = vmov 1326507024  }
  0x8e   : > { %v609_v6 = vshrl.u32 %v1652_v15, %v597_v33  ;;  %v607_v47 = vor.u32 %v606_v4, %v605_v40  ;;  %v611_v43 = vshll.u32 %v1652_v15, %v596_v11  ;;  %v612_v29 = vshrl.u32 %v1653_v46, %v597_v33 }
  0x8f   : > { %v478_v18 = vmin.f32 %v477_v55, 1.0  ;;  %v481_v30 = vmul.f32 0.5, %v480_v58  ;;  %vm614_vm14 = vcmp.lt.s32.totalorder %v2268_v57, 1  ;;  %v484_v10 = vmul.f32 0.009090909, %v475_v1 }
  0x90   : > { %v610_v0 = vor.u32 %v609_v6, %v608_v54  ;;  %v613_v14 = vor.u32 %v612_v29, %v611_v43  ;;  %vm616_vm0 = vcmp.lt.s32.totalorder %v2268_v57, 3  ;;  %vm617_vm3 = vcmp.lt.s32.totalorder %v2268_v57, 4 }
  0x91   : > { %v482_v27 = vmax.f32 %v481_v30, 0.0  ;;  %v489_v24 = vsub.f32 %v2195_v21, %v478_v18  ;;  %vm615_vm4 = vcmp.lt.s32.totalorder %v2268_v57, 2  ;;  %v619_v35 = vsel %vm617_vm3, %v607_v47, 2102212464  ;;  %1048 = vst [vmem:[%s286_s6] sm:$0xff] %v478_v18 }
  0x92   : > { %v485_v26 = vadd.f32 1.0, %v484_v10  ;;  %v618_v13 = vsel %vm614_vm14, %v598_v8, %v601_v16  ;;  %v622_v17 = vsel %vm614_vm14, %v601_v16, %v604_v48  ;;  %v623_v11 = vsel %vm617_vm3, %v610_v0, 920167782 }
  0x93   : > { %v483_v25 = vmin.f32 %v482_v27, 1.0  ;;  %v490_v19 = vand.u32 2147483647, %v489_v24  ;;  %v620_v21 = vsel %vm616_vm0, %v604_v48, %v619_v35  ;;  %v624_v59 = vsel %vm616_vm0, %v607_v47, %v623_v11 }
  0x94   : > { %v486_v36 = vmul.f32 0.5, %v485_v26  ;;  %v625_v33 = vsel %vm615_vm4, %v622_v17, %v624_v59  ;;  %v626_v60 = vsel %vm614_vm14, %v604_v48, %v607_v47  ;;  %v627_v34 = vsel %vm617_vm3, %v613_v14, 1326507024 }
  0x95   : > { %v491_v56 = vsub.f32 %v2240_v61, %v483_v25  ;;  %v628_v39 = vsel %vm616_vm0, %v610_v0, %v627_v34  ;;  %v2322_v5 = vmul.u32.u64.low %v2257_v41, %v625_v33  ;;  %v2323_v63 = vmul.u32.u64.high %v2257_v41, %v625_v33, %v2322_v5 }
  0x96   : > { %v487_v31 = vmax.f32 %v486_v36, 0.0  ;;  %v621_v23 = vsel %vm615_vm4, %v618_v13, %v620_v21  ;;  %v629_v40 = vsel %vm615_vm4, %v626_v60, %v628_v39  ;;  %v691_v53 = vshrl.u32 %v690_v2, 23 }
  0x97   : > { %v492_v50 = vand.u32 2147483647, %v491_v56  ;;  %v2333_v61 = vmul.u32.u64.low %v2257_v41, %v629_v40  ;;  %v2334_v9 = vmul.u32.u64.high %v2257_v41, %v629_v40, %v2333_v61  ;;  %v637_v16 = vmul.u32 %v2257_v41, %v621_v23 }
  0x98   : > { %v488_v4 = vmin.f32 %v487_v31, 1.0  ;;  %v1236_v37 = vadd.s32 4294967169, %v691_v53  ;;  %v640_v54 = vadd.s32 1, %v2323_v63  ;;  %v687_v57 = vand.u32 2147483647, %v2250_v3 }
  0x99   : > { %v493_v8 = vadd.f32 %v492_v50, %v490_v19  ;;  %vm639_vm5 = vc.u32 %v2334_v9, %v2322_v5  ;;  %v1654_v14 = vmov 0.0   ;;  %v1015_v26 = vrot.slane %v1746_v28, 4 }
  0x9a   : > { %v494_v55 = vsub.f32 %v2259_v22, %v488_v4  ;;  %v697_v58 = vadd.s32 1, %v1236_v37  ;;  %v641_v48 = vsel %vm639_vm5, %v640_v54, %v2323_v63  ;;  %v694_v22 = vand.u32 8388607, %v687_v57  ;;  %1043 = vst [vmem:[%s2347_s10] sm:$0xf] %v1654_v14 }
  0x9b   : > { %v642_v41 = vadd.s32 %v641_v48, %v637_v16  ;;  %vm1033_vm11 = vcmask 1040384   ;;  %vm584_vm7 = vcmp.lt.s32.totalorder %v2175_v7, 0  ;;  %vm2391_vm10 = vcmp.le.f32.partialorder %v582_v20, 0.7853982 }
  0x9c   : > { %v495_v2 = vand.u32 2147483647, %v494_v55  ;;  %vm698_vm6 = vcmp.gt.s32.totalorder %v697_v58, 0  ;;  %v695_v13 = vor.u32 8388608, %v694_v22  ;;  %vm689_vm14 = vcmp.lt.s32.totalorder %v2250_v3, 0 }
  0x9d   : > { %v699_v6 = vsel %vm698_vm6, %v697_v58, 0  ;;  %v643_v43 = vadd.s32 536870912, %v642_v41  ;;  %vm688_vm0 = vcmp.le.f32.partialorder %v687_v57, 0.7853982 }
  0x9e   : > { %v2349_v1 = vadd.f32 %v495_v2, %v493_v8  ;;  %v701_v47 = vand.u32 31, %v699_v6  ;;  %v700_v29 = vshrl.u32 %v699_v6, 5 }
  0x9f   : > { %v2357_v27 = vshrl.u32 %v643_v43, 30 }
  0xa0   : > { %v702_v18 = vsub.s32 32, %v701_v47  ;;  %v704_v30 = vshll.u32 %v1648_v12, %v701_v47  ;;  %v707_v0 = vshll.u32 %v1649_v38, %v701_v47  ;;  %v710_v10 = vshll.u32 %v1650_v45, %v701_v47 }
  0xa1   : > { %v713_v24 = vshll.u32 %v1651_v51, %v701_v47  ;;  %v716_v35 = vshll.u32 %v1652_v15, %v701_v47  ;;  %v645_v19 = vshll.u32 %v2357_v27, 30  ;;  %vm719_vm9 = vcmp.lt.s32.totalorder %v700_v29, 1 }
  0xa2   : > { %v705_v17 = vshrl.u32 %v1649_v38, %v702_v18  ;;  %v708_v11 = vshrl.u32 %v1650_v45, %v702_v18  ;;  %v711_v25 = vshrl.u32 %v1651_v51, %v702_v18  ;;  %v703_v21 = vshrl.u32 %v1648_v12, %v702_v18 }
  0xa3   : > { %v714_v59 = vshrl.u32 %v1652_v15, %v702_v18  ;;  %v717_v36 = vshrl.u32 %v1653_v46, %v702_v18  ;;  %v646_v56 = vsub.s32 %v642_v41, %v645_v19  ;;  %v1016_v38 = vadd.f32 %v1015_v26, %v1746_v28 }
  0xa4   : > { %v706_v33 = vor.u32 %v705_v17, %v704_v30  ;;  %v709_v60 = vor.u32 %v708_v11, %v707_v0  ;;  %v712_v34 = vor.u32 %v711_v25, %v710_v10  ;;  %vm720_vm12 = vcmp.lt.s32.totalorder %v700_v29, 2 }
  0xa5   : > { %v715_v39 = vor.u32 %v714_v59, %v713_v24  ;;  %v718_v63 = vor.u32 %v717_v36, %v716_v35  ;;  %vm721_vm8 = vcmp.lt.s32.totalorder %v700_v29, 3  ;;  %vm722_vm1 = vcmp.lt.s32.totalorder %v700_v29, 4 }
  0xa6   : > { %v735_v45 = vshll.u32 %v695_v13, 8  ;;  %v648_v51 = vsub.s32 0, %v646_v56  ;;  %v723_v31 = vsel %vm719_vm9, %v703_v21, %v706_v33  ;;  %v724_v12 = vsel %vm722_vm1, %v712_v34, 2102212464 }
  0xa7   : > { %v727_v23 = vsel %vm719_vm9, %v706_v33, %v709_v60  ;;  %v725_v15 = vsel %vm721_vm8, %v709_v60, %v724_v12  ;;  %v728_v40 = vsel %vm722_vm1, %v715_v39, 920167782  ;;  %v731_v46 = vsel %vm719_vm9, %v709_v60, %v712_v34 }
  0xa8   : > { %v732_v53 = vsel %vm722_vm1, %v718_v63, 1326507024  ;;  %v1233_v50 = vmin.u32 %v648_v51, %v646_v56  ;;  %v729_v61 = vsel %vm721_vm8, %v712_v34, %v728_v40  ;;  %v1017_v37 = vrot.slane %v1016_v38, 2 }
  0xa9   : > { %v733_v4 = vsel %vm721_vm8, %v715_v39, %v732_v53  ;;  %v726_v16 = vsel %vm720_vm12, %v723_v31, %v725_v15  ;;  %v730_v28 = vsel %vm720_vm12, %v727_v23, %v729_v61  ;;  %v1009_v6 = vrot.slane %v2349_v1, 4 }
  0xaa   : > { %v650_v8 = vclz %v1233_v50  ;;  %v734_v54 = vsel %vm720_vm12, %v731_v46, %v733_v4  ;;  %v2376_v2 = vmul.u32.u64.low %v735_v45, %v730_v28  ;;  %v2377_v48 = vmul.u32.u64.high %v735_v45, %v730_v28, %v2376_v2 }
  0xab   : > { %v2373_v55 = vmul.u32.u64.low %v735_v45, %v734_v54  ;;  %v2374_v58 = vmul.u32.u64.high %v735_v45, %v734_v54, %v2373_v55  ;;  %v1018_v22 = vadd.f32 %v1017_v37, %v1016_v38  ;;  %v638_v47 = vadd.s32 %v2322_v5, %v2334_v9 }
  0xac   : > { %v1234_v41 = vadd.s32 4294967294, %v650_v8  ;;  %v742_v43 = vmul.u32 %v735_v45, %v726_v16  ;;  %v745_v29 = vadd.s32 1, %v2377_v48  ;;  %v1010_v14 = vadd.f32 %v1009_v6, %v2349_v1 }
  0xad   : > { %vm744_vm2 = vc.u32 %v2374_v58, %v2376_v2  ;;  %v1019_v35 = vrot.slane %v1018_v22, 1  ;;  %v743_v46 = vadd.s32 %v2376_v2, %v2374_v58  ;;  %v668_v37 = vsub.s32 4, %v2357_v27 }
  0xae   : > { %vm1235_vm13 = vcmp.lt.s32.totalorder %v1234_v41, 0  ;;  %v746_v24 = vsel %vm744_vm2, %v745_v29, %v2377_v48  ;;  %v1011_v11 = vrot.slane %v1010_v14, 2  ;;  %vm674_vm8 = vweird.f32 %v2175_v7 }
  0xaf   : > { %v653_v18 = vsel %vm1235_vm13, 0, %v1234_v41  ;;  %v747_v17 = vadd.s32 %v746_v24, %v742_v43  ;;  %v1020_v33 = vadd.f32 %v1019_v35, %v1018_v22  ;;  %v669_v55 = vsel %vm584_vm7, %v668_v37, %v2357_v27 }
  0xb0   : > { %v654_v30 = vsub.s32 32, %v653_v18  ;;  %v655_v0 = vshll.u32 %v646_v56, %v653_v18  ;;  %v658_v10 = vsub.s32 4294967266, %v653_v18  ;;  %v1012_v19 = vadd.f32 %v1011_v11, %v1010_v14 }
  0xb1   : > { %v748_v25 = vadd.s32 536870912, %v747_v17  ;;  %v671_v41 = vsel %vm2391_vm10, 0, %v669_v55 }
  0xb2   : > { %v656_v26 = vshrl.u32 %v638_v47, %v654_v30  ;;  %v659_v13 = vadd.s32 127, %v658_v10  ;;  %v1013_v36 = vrot.slane %v1012_v19, 1  ;;  %v886_v43 = vadd.s32 3, %v671_v41 }
  0xb3   : > { %v749_v59 = vshrl.u32 %v748_v25, 30  ;;  %v675_v10 = vand.u32 3, %v671_v41 }
  0xb4   : > { %v657_v5 = vor.u32 %v656_v26, %v655_v0  ;;  %v660_v9 = vshll.u32 %v659_v13, 23  ;;  %v1014_v1 = vadd.f32 %v1013_v36, %v1012_v19  ;;  %v887_v24 = vand.u32 3, %v886_v43 }
  0xb5   : > { %v750_v56 = vshll.u32 %v749_v59, 30  ;;  %v773_v48 = vsub.s32 4, %v749_v59  ;;  %vm677_vm3 = vcmp.eq.s32.totalorder %v675_v10, 0  ;;  %vm680_vm4 = vcmp.eq.s32.totalorder %v675_v10, 2 }
  0xb6   : > { %v661_v21 = vor.u32 4788187, %v660_v9  ;;  %v664_v34 = vcvt.s32.f32 %v657_v5  ;;  %v2386_v63 = vsel %vm1033_vm11, %v1014_v1, %v1020_v33  ;;  %vm889_vm5 = vcmp.eq.s32.totalorder %v887_v24, 0 }
  0xb7   : > { %v751_v39 = vsub.s32 %v747_v17, %v750_v56  ;;  %v774_v47 = vsel %vm689_vm14, %v773_v48, %v749_v59  ;;  %vm892_vm6 = vcmp.eq.s32.totalorder %v887_v24, 2  ;;  %vm676_vm9 = vcmp.lt.s32.totalorder %v675_v10, 2 }
  0xb8   : > { %v662_v60 = vand.u32 2147483647, %v661_v21  ;;  %v776_v27 = vsel %vm688_vm0, 0, %v774_v47  ;;  %vm888_vm12 = vcmp.lt.s32.totalorder %v887_v24, 2 }
  0xb9   : > { %v753_v45 = vsub.s32 0, %v751_v39  ;;  %v991_v35 = vadd.s32 3, %v776_v27  ;;  %v780_v57 = vand.u32 3, %v776_v27 }
  0xba   : > { %v665_v38 = vmul.f32 %v664_v34, %v662_v60 }
  0xbb   : > { %v1237_v51 = vmin.u32 %v753_v45, %v751_v39  ;;  %v992_v17 = vand.u32 3, %v991_v35  ;;  %vm785_vm1 = vcmp.eq.s32.totalorder %v780_v57, 2  ;;  %vm781_vm2 = vcmp.lt.s32.totalorder %v780_v57, 2 }
  0xbc   : > { %v666_v31 = vxor.u32 2147483648, %v665_v38  ;;  %vm782_vm11 = vcmp.eq.s32.totalorder %v780_v57, 0 }
  0xbd   : > { %v755_v12 = vclz %v1237_v51  ;;  %vm997_vm13 = vcmp.eq.s32.totalorder %v992_v17, 2 }
  0xbe   : > { %v667_v40 = vsel %vm584_vm7, %v666_v31, %v665_v38  ;;  %vm994_vm7 = vcmp.eq.s32.totalorder %v992_v17, 0 }
  0xbf   : > { %v1238_v23 = vadd.s32 4294967294, %v755_v12  ;;  %v670_v8 = vsel %vm2391_vm10, %v2175_v7, %v667_v40  ;;  %vm993_vm10 = vcmp.lt.s32.totalorder %v992_v17, 2  ;;  %v1027_v40 = vrot.slane %v1855_v49, 4 }
  0xc0   : > { %1616 = vcosq.f32 %v670_v8 }
  0xc1   : > { %vm1239_vm15 = vcmp.lt.s32.totalorder %v1238_v23, 0  ;;  %1618 = vsinq.f32 %v670_v8 }
  0xc2   : > { %v758_v53 = vsel %vm1239_vm15, 0, %v1238_v23  ;;  %vm779_vm15 = vweird.f32 %v2250_v3 }
  0xc3   : > { %v759_v50 = vsub.s32 32, %v758_v53  ;;  %v760_v61 = vshll.u32 %v751_v39, %v758_v53  ;;  %v763_v4 = vsub.s32 4294967266, %v758_v53 }
  0xc5   : > { %v761_v20 = vshrl.u32 %v743_v46, %v759_v50  ;;  %v764_v16 = vadd.s32 127, %v763_v4 }
  0xc7   : > { %v762_v28 = vor.u32 %v761_v20, %v760_v61  ;;  %v765_v54 = vshll.u32 %v764_v16, 23  ;;  %v1028_v61 = vadd.f32 %v1027_v40, %v1855_v49 }
  0xc9   : > { %v766_v58 = vor.u32 4788187, %v765_v54  ;;  %v769_v2 = vcvt.s32.f32 %v762_v28  ;;  %v1029_v20 = vrot.slane %v1028_v61, 2 }
  0xca   : > { %v1617_v29 = vpop.eup %1616 }
  0xcb   : > { %v767_v6 = vand.u32 2147483647, %v766_v58  ;;  %v1619_v0 = vpop.eup %1618  ;;  %v681_v13 = vxor.u32 2147483648, %v1617_v29  ;;  %v1030_v54 = vadd.f32 %v1029_v20, %v1028_v61 }
  0xcc   : > { %v678_v26 = vxor.u32 2147483648, %v1619_v0 }
  0xcd   : > { %v770_v22 = vmul.f32 %v769_v2, %v767_v6  ;;  %v682_v5 = vsel %vm680_vm4, %v681_v13, %v1619_v0  ;;  %v894_v25 = vsel %vm892_vm6, %v681_v13, %v1619_v0  ;;  %v1044_v6 = vld [vmem:[%s2347_s10] sm:$0xf] }
  0xce   : > { %v679_v11 = vsel %vm677_vm3, %v1617_v29, %v678_v26  ;;  %v891_v9 = vsel %vm889_vm5, %v1617_v29, %v678_v26 }
  0xcf   : > { %v771_v18 = vxor.u32 2147483648, %v770_v22  ;;  %v683_v19 = vsel %vm676_vm9, %v679_v11, %v682_v5  ;;  %v895_v21 = vsel %vm888_vm12, %v891_v9, %v894_v25 }
  0xd0   : > { %v684_v60 = vsel %vm674_vm8, nan, %v683_v19  ;;  %v896_v56 = vsel %vm674_vm8, nan, %v895_v21 }
  0xd1   : > { %v772_v30 = vsel %vm689_vm14, %v771_v18, %v770_v22  ;;  %v685_v45 = vmul.f32 %v684_v60, %v2097_v42  ;;  %v897_v31 = vmul.f32 %v896_v56, %v2097_v42  ;;  %v1007_v42 = vand.u32 2147483647, %v1006_v32 }
  0xd2   : > { %v775_v14 = vsel %vm688_vm0, %v2250_v3, %v772_v30  ;;  %vm1035_vm14 = vcmask 1041408   ;;  %vm1037_vm0 = vcmask 1042432  }
  0xd3   : > { %1620 = vcosq.f32 %v775_v14 }
  0xd4   : > { %1622 = vsinq.f32 %v775_v14 }
  0xdd   : > { %v1621_v59 = vpop.eup %1620 }
  0xde   : > { %v1623_v36 = vpop.eup %1622  ;;  %v786_v33 = vxor.u32 2147483648, %v1621_v59 }
  0xdf   : > { %v783_v34 = vxor.u32 2147483648, %v1623_v36 }
  0xe0   : > { %v787_v1 = vsel %vm785_vm1, %v786_v33, %v1623_v36  ;;  %v999_v39 = vsel %vm997_vm13, %v786_v33, %v1623_v36 }
  0xe1   : > { %v784_v38 = vsel %vm782_vm11, %v1621_v59, %v783_v34  ;;  %v996_v7 = vsel %vm994_vm7, %v1621_v59, %v783_v34 }
  0xe2   : > { %v788_v51 = vsel %vm781_vm2, %v784_v38, %v787_v1  ;;  %v1000_v12 = vsel %vm993_vm10, %v996_v7, %v999_v39 }
  0xe3   : > { %v789_v23 = vsel %vm779_vm15, nan, %v788_v51  ;;  %v1001_v15 = vsel %vm779_vm15, nan, %v1000_v12 }
  0xe4   : > { %v790_v46 = vmul.f32 %v789_v23, %v2182_v62  ;;  %v1002_v53 = vmul.f32 %v1001_v15, %v2182_v62  ;;  %v1031_v62 = vrot.slane %v1030_v54, 1 }
  0xe6   : > { %v791_v50 = vsub.f32 %v685_v45, %v790_v46  ;;  %v1003_v3 = vsub.f32 %v897_v31, %v1002_v53  ;;  %v1032_v41 = vadd.f32 %v1031_v62, %v1030_v54 }
  0xe8   : > { %v792_v4 = vand.u32 2147483647, %v791_v50  ;;  %v1004_v37 = vand.u32 2147483647, %v1003_v3 }
  0xea   : > { %v1005_v8 = vadd.f32 %v1004_v37, %v792_v4 }
  0xec   : > { %v1008_v16 = vadd.f32 %v1007_v42, %v1005_v8 }
  0xee   : > { %v1021_v28 = vrot.slane %v1008_v16, 4 }
  0xf0   : > { %v1022_v55 = vadd.f32 %v1021_v28, %v1008_v16 }
  0xf2   : > { %v1023_v58 = vrot.slane %v1022_v55, 2 }
  0xf4   : > { %v1024_v2 = vadd.f32 %v1023_v58, %v1022_v55 }
  0xf6   : > { %v1025_v48 = vrot.slane %v1024_v2, 1 }
  0xf8   : > { %v1026_v49 = vadd.f32 %v1025_v48, %v1024_v2 }
  0xfa   : > { %v1036_v44 = vsel %vm1035_vm14, %v2386_v63, %v1026_v49 }
  0xfb   : > { %v1038_v52 = vsel %vm1037_vm0, %v1036_v44, %v1032_v41 }
  0xfc   : > { %v1045_v32 = vadd.f32 %v1044_v6, %v1038_v52 }
  0xfe   : > { %1046 = vst [vmem:[%s2347_s10] sm:$0xf] %v1045_v32 }
  0xff PF: > { %s15_s17 = sadd.s32 1, %s1646_s17   ;;  %s2463_s15 = smov %s1642_s16 }
 0x100   : > { %p12_p5 = scmp.ge.s32.totalorder %s15_s17, 4   ;;  %s2464_s16 = smov %s2466_s18 }
 0x102   :  { %14 = sbr.rel (!%p12_p5) target bundleno = 2 (0x2), region = 93 }

</bundles_post_ra>
